<compile_context>
chip_gen: v6e
topology: v6e:2x2x1
jax: 0.10.0
libtpu: 0.0.40
codegen_flags: <defaults>
</compile_context>

<pallas_src>
import functools

import jax
import jax.numpy as jnp
import numpy as np
from jax.experimental import pallas as pl
from jax.experimental.pallas import tpu as pltpu


def _upsample_kernel(x_ref, o_ref, *, s_h, s_w):
    # x_ref: (TC, TH, W)  (leading B block dim squeezed away)
    # o_ref: (TC, TH, s_h * W * s_w)
    x = x_ref[...]
    tc, th, w = x.shape
    if s_w > 1:
        # Nearest W replication into the lane dim: out[..., w*s_w + kw] = x[..., w]
        x = jnp.broadcast_to(x[:, :, :, None], (tc, th, w, s_w))
        x = x.reshape(tc, th, w * s_w)
    if s_h > 1:
        # H replication folded into the lane dim as well (kh-major), so the whole
        # output block is produced by a single lane-dense full-tile store.
        x = jnp.concatenate([x] * s_h, axis=-1)
    o_ref[...] = x


def _round_up(x, m):
    return -(-x // m) * m


def _pick_tiles(B, C, H, W, s_h, s_w, itemsize,
                budget_bytes=16 * 1024 * 1024):
    """Pick (TC, TH) channel/row tiles.

    The estimate is padding-aware ((8,128)-style tile rounding, dtype sublane
    packing, double buffering of both in and out blocks).  Preference order:
    (a) fits the VMEM budget, (b) >=2 total grid steps on the parallel axes
    (so both v7x TensorCores get work), (c) largest block (amortizes the
    ~0.35us/step overhead on single-TC v5e/v6e).
    """
    tile_rows = {4: 8, 2: 16, 1: 32}.get(itemsize, 8)
    w_in = _round_up(W, 128)
    w_out = _round_up(s_h * s_w * W, 128)

    def footprint(tc, th):
        th_p = _round_up(th, tile_rows)
        return 2 * tc * th_p * (w_in + w_out) * itemsize  # 2x = double buffered

    th_cands = sorted({H} | set(range(tile_rows, H + 1, tile_rows)), reverse=True)
    tc_cands = []
    tc = C
    while True:
        tc_cands.append(tc)
        if tc == 1:
            break
        tc = (tc + 1) // 2

    best = None  # (steps_ok, footprint, tc, th)
    for tc in tc_cands:
        for th in th_cands:
            fp = footprint(tc, th)
            if fp > budget_bytes:
                continue
            steps = B * pl.cdiv(C, tc) * pl.cdiv(H, th)
            cand = (steps >= 2, fp, tc, th)
            if best is None or cand[:2] > best[:2]:
                best = cand
    if best is None:
        # Even the minimal block exceeds the budget: fall back to the smallest
        # legal block and rely on vmem_limit_bytes headroom.
        # TODO(synk): add a W-tiling grid axis for extremely wide images.
        return 1, min(H, tile_rows)
    return best[2], best[3]


def _resolve_scales(H, W, size, scale_factor):
    if scale_factor is not None:
        if isinstance(scale_factor, (tuple, list)):
            s_h, s_w = scale_factor
        else:
            s_h = s_w = scale_factor
    elif size is not None:
        if isinstance(size, (tuple, list)):
            oh, ow = size
        else:
            oh = ow = size
        if oh % H or ow % W:
            raise NotImplementedError("Only integer upscaling factors supported.")
        s_h, s_w = oh // H, ow // W
    else:
        raise ValueError("Either size or scale_factor must be given.")
    if float(s_h) != float(int(s_h)) or float(s_w) != float(int(s_w)):
        # TODO(synk): non-integer nearest scale factors need a row/col gather.
        raise NotImplementedError("Only integer scale factors are supported.")
    return int(s_h), int(s_w)


def upsample_forward(x_nchw, size=None, scale_factor=None, mode="nearest",
                     align_corners=None):
    """Pallas TPU forward of Upsample / F.interpolate (nearest, integer factors)."""
    if mode != "nearest":
        # TODO(synk): bilinear/bicubic/linear interpolation modes not implemented.
        raise NotImplementedError("Only mode='nearest' is implemented.")
    del align_corners  # ignored by nearest interpolation (as in PyTorch)

    B, C, H, W = x_nchw.shape
    s_h, s_w = _resolve_scales(H, W, size, scale_factor)
    if s_h == 1 and s_w == 1:
        return x_nchw

    itemsize = jnp.dtype(x_nchw.dtype).itemsize
    TC, TH = _pick_tiles(B, C, H, W, s_h, s_w, itemsize)
    grid = (B, pl.cdiv(C, TC), pl.cdiv(H, TH))
    out_minor = s_h * s_w * W

    out4 = pl.pallas_call(
        functools.partial(_upsample_kernel, s_h=s_h, s_w=s_w),
        out_shape=jax.ShapeDtypeStruct((B, C, H, out_minor), x_nchw.dtype),
        grid_spec=pltpu.PrefetchScalarGridSpec(
            num_scalar_prefetch=0,
            grid=grid,
            in_specs=[pl.BlockSpec((pl.Squeezed(), TC, TH, W),
                                   lambda b, c, h: (b, c, h, 0))],
            out_specs=pl.BlockSpec((pl.Squeezed(), TC, TH, out_minor),
                                   lambda b, c, h: (b, c, h, 0)),
        ),
        compiler_params=pltpu.CompilerParams(
            dimension_semantics=("parallel", "parallel", "parallel"),
            vmem_limit_bytes=48 * 1024 * 1024),
    )(x_nchw)

    # Free row-major view: (B, C, H, s_h*W*s_w) == (B, C, H*s_h, W*s_w).
    return out4.reshape(B, C, H * s_h, W * s_w)


def upsample_reference(x, s_h, s_w):
    """Pure-JAX reference (NCHW) of nearest upsampling with integer factors."""
    return jnp.repeat(jnp.repeat(x, s_h, axis=2), s_w, axis=3)


if __name__ == "__main__":
    B, C, H, W = 2, 4, 16, 16
    key = jax.random.PRNGKey(0)
    x = jax.random.normal(key, (B, C, H, W), dtype=jnp.float32)

    # Case 1: the module's typical use, scale_factor=2.
    out = jax.block_until_ready(
        upsample_forward(x, scale_factor=2, mode="nearest"))
    ref = jax.block_until_ready(upsample_reference(x, 2, 2))
    assert out.shape == (B, C, H * 2, W * 2)
    np.testing.assert_array_equal(np.asarray(out), np.asarray(ref))

    # Case 2: asymmetric integer factors via `size`.
    out2 = jax.block_until_ready(
        upsample_forward(x, size=(H * 2, W * 3), mode="nearest"))
    ref2 = jax.block_until_ready(upsample_reference(x, 2, 3))
    assert out2.shape == (B, C, H * 2, W * 3)
    np.testing.assert_array_equal(np.asarray(out2), np.asarray(ref2))

    print("KERNEL_OK")
</pallas_src>

<mosaic_0001>
module attributes {stable_mosaic.version = 11 : i64} {
  func.func @_upsample_kernel(%arg0: i32, %arg1: i32, %arg2: i32, %arg3: memref<1x4x16x16xf32, #tpu.memory_space<vmem>>, %arg4: memref<1x4x16x64xf32, #tpu.memory_space<vmem>>) attributes {dimension_semantics = [#tpu.dimension_semantics<parallel>, #tpu.dimension_semantics<parallel>, #tpu.dimension_semantics<parallel>], iteration_bounds = array<i64: 2, 1, 1>, scalar_prefetch = 0 : i64, scratch_operands = 0 : i64, tpu.core_type = #tpu.core_type<tc>, window_params = [{transform_indices = @transform_0, window_bounds = array<i64: 1, 4, 16, 16>}, {transform_indices = @transform_1, window_bounds = array<i64: 1, 4, 16, 64>}]} {
    %c0 = arith.constant 0 : index
    %c0_0 = arith.constant 0 : index
    %c0_1 = arith.constant 0 : index
    %c0_2 = arith.constant 0 : index
    %0 = vector.load %arg3[%c0, %c0_0, %c0_1, %c0_2] : memref<1x4x16x16xf32, #tpu.memory_space<vmem>>, vector<1x4x16x16xf32>
    %1 = vector.shape_cast %0 : vector<1x4x16x16xf32> to vector<4x16x16xf32>
    %2 = vector.shape_cast %1 : vector<4x16x16xf32> to vector<4x16x16x1xf32>
    %3 = vector.shape_cast %2 : vector<4x16x16x1xf32> to vector<4x16x16x1xf32>
    %4 = vector.broadcast %3 : vector<4x16x16x1xf32> to vector<4x16x16x2xf32>
    %5 = vector.shape_cast %4 : vector<4x16x16x2xf32> to vector<4x16x32xf32>
    %6 = tpu.concatenate %5, %5 in 2 : vector<4x16x32xf32>, vector<4x16x32xf32> -> vector<4x16x64xf32>
    %c0_3 = arith.constant 0 : index
    %c0_4 = arith.constant 0 : index
    %c0_5 = arith.constant 0 : index
    %c0_6 = arith.constant 0 : index
    %7 = vector.load %arg4[%c0_3, %c0_4, %c0_5, %c0_6] : memref<1x4x16x64xf32, #tpu.memory_space<vmem>>, vector<1x4x16x64xf32>
    %8 = vector.shape_cast %7 : vector<1x4x16x64xf32> to vector<4x16x64xf32>
    %9 = vector.shape_cast %6 : vector<4x16x64xf32> to vector<1x4x16x64xf32>
    tpu.vector_store %arg4[%c0_3, %c0_4, %c0_5, %c0_6], %9 {strides = array<i32>} : memref<1x4x16x64xf32, #tpu.memory_space<vmem>>, vector<1x4x16x64xf32>,
    return
  }
  func.func @transform_0(%arg0: i32, %arg1: i32, %arg2: i32) -> (i32, i32, i32, i32) {
    %c0_i32 = arith.constant 0 : i32
    %c0_i32_0 = arith.constant 0 : i32
    return %arg0, %arg1, %arg2, %c0_i32 : i32, i32, i32, i32
  }
  func.func @transform_1(%arg0: i32, %arg1: i32, %arg2: i32) -> (i32, i32, i32, i32) {
    %c0_i32 = arith.constant 0 : i32
    %c0_i32_0 = arith.constant 0 : i32
    return %arg0, %arg1, %arg2, %c0_i32 : i32, i32, i32, i32
  }
}

</mosaic_0001>

<bundles_post_ra>
// kernel: tpu_custom_call.1
= control target key start
LH: loop header
LB: loop body
LE: loop exit
PB: predicated region body
PF: predicated region fallthrough
CT: control target
= control target key end

     0   :  { %6 = vsyncpa [#allocation3], 0  ;;  %s6385_s0 = inlined_call_operand.hbm [shape: f32[2,4,16,16], index: 0, kind: input, shape index: {}]   ;;  %s6386_s1 = inlined_call_operand.hbm [shape: f32[2,4,16,64], index: 1, kind: output, shape index: {}]  }
   0x1   :  { %8 = vsyncpa [#allocation3 + $0x1], 0 }
   0x2   :  { %9 = vsyncpa [#allocation4], 0 }
   0x3   :  { %11 = vsyncpa [#allocation4 + $0x1], 0  ;;  %s4080_s6 = smov 0   ;;  %s4082_s7 = smov 0  }
   0x4   :  { %s4084_s8 = smov 0   ;;  %s4086_s9 = smov 0  }
   0x5   :  { %s4088_s10 = smov 0   ;;  %s4090_s11 = smov 0  }
   0x6 LB: > { %s3837_s12 = sadd.s32 4294967295, %s4045_s11   ;;  %s3838_s13 = sadd.s32 4294967294, %s4045_s11   ;;  %s4045_s11 = sphi %s4090_s11, %s17_s11   ;;  %s4041_s10 = sphi %s4088_s10, %s6787_s10   ;;  %s4037_s9 = sphi %s4086_s9, %s6786_s9   ;;  %s4033_s8 = sphi %s4084_s8, %s6785_s8   ;;  %s4029_s7 = sphi %s4082_s7, %s6784_s7   ;;  %s4025_s6 = sphi %s4080_s6, %s6783_s6  }
   0x7   : > { %s36_s14 = sadd.s32 1, %s4041_s10  ;;  %s47_s15 = sadd.s32 1, %s4033_s8 }
   0x8   : > { %p38_p0 = scmp.ge.s32.totalorder %s36_s14, 2  ;;  %p54_p1 = scmp.ne.s32.totalorder %s4033_s8, %s4029_s7 }
   0x9   : > { %p55_p2 = scmp.eq.s32.totalorder %s4045_s11, 0  ;;  %p60_p3 = scmp.ne.s32.totalorder %s4029_s7, %s4025_s6 }
   0xa   : > { %s6789_s14 = smov (%p38_p0, %s36_s14), 0  ;;  %p61_p5 = scmp.eq.s32.totalorder %s3837_s12, 0 }
   0xb   : > { %p4121_p4 = por %p55_p2, %p54_p1  ;;  %s40_s17 = ssub.s32 %s4041_s10, %s6789_s14 }
   0xc   : > { %p88_p6 = scmp.eq.s32.totalorder %s3837_s12, 1  ;;  %p45_p7 = scmp.eq.s32.totalorder %s40_s17, 0 }
   0xd   : > { %p4127_p8 = por %p61_p5, %p60_p3  ;;  %p94_p10 = scmp.eq.s32.totalorder %s3838_s13, 1 }
   0xe   : > { %p4131_p9 = por %p88_p6, %p54_p1  ;;  %p3866_p13 = scmp.lt.s32.totalorder %s4045_s11, 2 }
   0xf   : > { %s4136_s20 = scalar_select %p45_p7, %s4033_s8, %s47_s15  }
  0x10   : > { %p4138_p11 = por %p94_p10, %p60_p3  ;;  %s114_s22 = sand.u32 1, %s4033_s8  }
  0x11   : > { %s3841_s23 = sshll.u32 %s114_s22, 6  ;;  %s3852_s24 = sshll.u32 %s4041_s10, 10 }
  0x12   : > { %s129_s27 = scalar_lea.hbm %s6385_s0, %s3852_s24  ;;  %s118_s28 = scalar_lea.vmem [#allocation2], %s3841_s23 }
  0x13   : > { %s130_s29 = sshll.u32 %s118_s28, 4  ;;  %p4151_p0 = pnand %p3866_p13, %p4121_p4  ;;  %s131_s29 = int_to_ptr.vmem [resolvable:$true] %s130_s29 }
  0x14   : > { %p3844_p1 = scmp.ge.s32.totalorder %s4045_s11, 1  ;;  %s115_s2 = scalar_lea.sflag [#allocation3], %s114_s22 }
  0x15   : > { %p3939_p2 = pneg %p4151_p0  ;;  %s3950_s3 = scalar_lea.vmem %s131_s29, 1024 }
  0x16   : > { %p3951_p3 = scmp.ne.s32.totalorder %s131_s29, %s3950_s3  ;;  %s4047_s4 = smov [#allocation2]  }
  0x17   : > { %s3955_s5 = sshll.u32 %s4047_s4, 4  ;;  %s3956_s5 = int_to_ptr.vmem [resolvable:$false] %s3955_s5 }
  0x18   : > { %p3953_p5 = pnand %p3951_p3, %p3939_p2  ;;  %s3957_s12 = scalar_lea.vmem %s3956_s5, 2048 }
  0x19   : > { %p3958_p7 = scmp.lt.s32.totalorder %s131_s29, %s3956_s5  ;;  %p3959_p10 = scmp.lt.s32.totalorder %s3957_s12, %s3950_s3 }
  0x1a   : > { %p3954_p6 = pneg %p3953_p5 }
  0x1b   : > { %p3960_p12 = por %p3959_p10, %p3958_p7 }
  0x1d   : > { %p3961_p4 = pnand %p3960_p12, %p3954_p6 }
  0x1f   : > { %3964 = shalt.err (!%p3961_p4)
}
  0x20   : > { %s4048_s13 = smov 128   ;;  %s4049_s15 = smov 8  }
  0x21   : > { %3861 = dma.hbm_to_vmem [thread:$0]  (!%p4151_p0), %s129_s27, 1024, %s131_s29, %s115_s2, %s4048_s13, %s4048_s13, %s4049_s15  }
  0x22   : > { %p138_p13 = scmp.lt.s32.totalorder %s4045_s11, 3 }
  0x24   : > { %p139_p2 = pnand %p3844_p1, %p138_p13 }
  0x26   : > { %142 = sbr.rel (%p139_p2) target bundleno = 902 (0x386), region = 24 }
  0x2b   : > { %s4164_s16 = sand.u32 1, %s4029_s7  }
  0x2c   : > { %s3845_s17 = sshll.u32 %s4164_s16, 6  ;;  %s145_s22 = scalar_lea.sflag [#allocation3], %s4164_s16 }
  0x2d   : > { %s4170_s23 = scalar_lea.vmem [#allocation2], %s3845_s17 }
  0x2e   : > { %4016 = dma.done.wait (%p4127_p8), %s145_s22, 1024  }
  0x2f   : > { %4018 = vsyncadd (%p4127_p8), %s145_s22, 4294966272  ;;  %v179_v0 = vlaneseq  ;;  %v171_v4 = vld [vmem:[%s4170_s23] sm:$0xff]  ;;  %v172_v19 = vld [vmem:[%s4170_s23 + $0x8] sm:$0xff]  ;;  %v4050_v47 = vmov 1983009808   ;;  %s4052_s18 = smov 2  }
  0x30   : > { %v173_v28 = vld [vmem:[%s4170_s23 + $0x10] sm:$0xff]  ;;  %v174_v37 = vld [vmem:[%s4170_s23 + $0x18] sm:$0xff]  ;;  %v886_v48 = vunpack.c.l.s4 %v4050_v47  ;;  %v175_v52 = vld [vmem:[%s4170_s23 + $0x20] sm:$0xff]  ;;  %s4053_s24 = smov 4   ;;  %s4054_s25 = smov 6   ;;  %vm3539_vm0 = vcmask 15360  }
  0x31   : > { %v4176_v1 = vshrl.u32 %v179_v0, 7  ;;  %s4055_s26 = smov 8   ;;  %s4056_s27 = smov 10   ;;  %vm3548_vm1 = vcmask 31744   ;;  %vm3557_vm2 = vcmask 48128   ;;  %vm3566_vm3 = vcmask 64512  }
  0x32   : > { %v887_v53 = vunpack.c.0.s8 %v886_v48  ;;  %v176_v48 = vld [vmem:[%s4170_s23 + $0x28] sm:$0xff]  ;;  %s4057_s28 = smov 12   ;;  %s4058_s29 = smov 14   ;;  %vm3575_vm4 = vcmask 80896   ;;  %vm3584_vm5 = vcmask 97280   ;;  %vm3593_vm6 = vcmask 113664  }
  0x33   : > { %v4179_v2 = vsub.s32 1, %v4176_v1  ;;  %v4182_v3 = vsub.s32 0, %v4176_v1  ;;  %v4188_v7 = vsub.s32 2, %v4176_v1  ;;  %v4192_v9 = vsub.s32 3, %v4176_v1  ;;  %s4059_s30 = smov 16   ;;  %s4060_s2 = smov 18  }
  0x34   : > { %v4196_v11 = vsub.s32 4, %v4176_v1  ;;  %v4200_v13 = vsub.s32 5, %v4176_v1  ;;  %v4204_v15 = vsub.s32 6, %v4176_v1  ;;  %v4208_v17 = vsub.s32 7, %v4176_v1  ;;  %s4061_s3 = smov 20   ;;  %s4062_s4 = smov 22  }
  0x35   : > { %v193_v5 = vrot.slane %v171_v4, %v4179_v2  ;;  %v182_v6 = vrot.slane %v171_v4, %v4182_v3  ;;  %v204_v8 = vrot.slane %v171_v4, %v4188_v7  ;;  %v215_v10 = vrot.slane %v171_v4, %v4192_v9  ;;  %s4063_s5 = smov 24   ;;  %s4064_s12 = smov 26  }
  0x36   : > { %v226_v12 = vrot.slane %v171_v4, %v4196_v11  ;;  %v237_v14 = vrot.slane %v171_v4, %v4200_v13  ;;  %v248_v16 = vrot.slane %v171_v4, %v4204_v15  ;;  %v259_v18 = vrot.slane %v171_v4, %v4208_v17  ;;  %s4065_s13 = smov 28   ;;  %s4066_s15 = smov 30  }
  0x37   : > { %195 = vbcast.lane.b32.xlu1 %v193_v5, 256  ;;  %184 = vbcast.lane.b32.xlu0 %v182_v6, 256  ;;  %v270_v20 = vrot.slane %v172_v19, %v4182_v3  ;;  %v281_v21 = vrot.slane %v172_v19, %v4179_v2  ;;  %v292_v22 = vrot.slane %v172_v19, %v4188_v7  ;;  %vm3602_vm7 = vcmask 130048   ;;  %s4067_s22 = smov 32  }
  0x38   : > { %v303_v23 = vrot.slane %v172_v19, %v4192_v9  ;;  %v314_v24 = vrot.slane %v172_v19, %v4196_v11  ;;  %v325_v25 = vrot.slane %v172_v19, %v4200_v13  ;;  %v336_v26 = vrot.slane %v172_v19, %v4204_v15 }
  0x39   : > { %v347_v27 = vrot.slane %v172_v19, %v4208_v17  ;;  %v358_v29 = vrot.slane %v173_v28, %v4182_v3  ;;  %v369_v30 = vrot.slane %v173_v28, %v4179_v2  ;;  %v380_v31 = vrot.slane %v173_v28, %v4188_v7 }
  0x3a   : > { %v391_v32 = vrot.slane %v173_v28, %v4192_v9  ;;  %v402_v33 = vrot.slane %v173_v28, %v4196_v11  ;;  %v413_v34 = vrot.slane %v173_v28, %v4200_v13  ;;  %v424_v35 = vrot.slane %v173_v28, %v4204_v15 }
  0x3b   : > { %199 = vbcast.lane.b32.xlu1 %v193_v5, 264  ;;  %188 = vbcast.lane.b32.xlu0 %v182_v6, 264  ;;  %v435_v36 = vrot.slane %v173_v28, %v4208_v17  ;;  %v446_v38 = vrot.slane %v174_v37, %v4182_v3  ;;  %v457_v39 = vrot.slane %v174_v37, %v4179_v2  ;;  %vm3611_vm8 = vcmask 146432  }
  0x3c   : > { %v468_v40 = vrot.slane %v174_v37, %v4188_v7  ;;  %v479_v41 = vrot.slane %v174_v37, %v4192_v9  ;;  %v490_v42 = vrot.slane %v174_v37, %v4196_v11  ;;  %v501_v43 = vrot.slane %v174_v37, %v4200_v13 }
  0x3d   : > { %v512_v46 = vrot.slane %v174_v37, %v4204_v15  ;;  %v523_v51 = vrot.slane %v174_v37, %v4208_v17  ;;  %v534_v56 = vrot.slane %v175_v52, %v4182_v3  ;;  %v4253_v57 = vsub.s32 %v887_v53, %v4176_v1 }
  0x3e   : > { %v545_v62 = vrot.slane %v175_v52, %v4179_v2  ;;  %vm3620_vm9 = vcmask 162816   ;;  %vm3629_vm10 = vcmask 179200   ;;  %vm3638_vm11 = vcmask 195584  }
  0x3f   : > { %210 = vbcast.lane.b32.xlu1 %v204_v8, 264  ;;  %206 = vbcast.lane.b32.xlu0 %v204_v8, 256  ;;  %v556_v8 = vrot.slane %v175_v52, %v4188_v7  ;;  %vm3647_vm12 = vcmask 211968   ;;  %vm3656_vm13 = vcmask 228352   ;;  %vm3665_vm14 = vcmask 244736  }
  0x40   : > { %vm3706_vm15 = vcmask 261120  }
  0x43   : > { %221 = vbcast.lane.b32.xlu1 %v215_v10, 264  ;;  %217 = vbcast.lane.b32.xlu0 %v215_v10, 256 }
  0x47   : > { %232 = vbcast.lane.b32.xlu1 %v226_v12, 264  ;;  %228 = vbcast.lane.b32.xlu0 %v226_v12, 256 }
  0x4b   : > { %243 = vbcast.lane.b32.xlu1 %v237_v14, 264  ;;  %239 = vbcast.lane.b32.xlu0 %v237_v14, 256  ;;  %v567_v14 = vrot.slane %v175_v52, %v4192_v9 }
  0x4f   : > { %254 = vbcast.lane.b32.xlu1 %v248_v16, 264  ;;  %250 = vbcast.lane.b32.xlu0 %v248_v16, 256  ;;  %v4051_v16 = vmov 1934713408  }
  0x53   : > { %265 = vbcast.lane.b32.xlu1 %v259_v18, 264  ;;  %261 = vbcast.lane.b32.xlu0 %v259_v18, 256  ;;  %v950_v18 = vunpack.c.l.s4 %v4051_v16  ;;  %v644_v16 = vrot.slane %v176_v48, %v4188_v7 }
  0x57   : > { %276 = vbcast.lane.b32.xlu1 %v270_v20, 264  ;;  %272 = vbcast.lane.b32.xlu0 %v270_v20, 256 }
  0x5b   : > { %287 = vbcast.lane.b32.xlu1 %v281_v21, 264  ;;  %283 = vbcast.lane.b32.xlu0 %v281_v21, 256  ;;  %v578_v21 = vrot.slane %v175_v52, %v4196_v11 }
  0x5f   : > { %298 = vbcast.lane.b32.xlu1 %v292_v22, 264  ;;  %294 = vbcast.lane.b32.xlu0 %v292_v22, 256  ;;  %v951_v22 = vunpack.c.0.s8 %v950_v18 }
  0x63   : > { %309 = vbcast.lane.b32.xlu1 %v303_v23, 264  ;;  %305 = vbcast.lane.b32.xlu0 %v303_v23, 256 }
  0x67   : > { %320 = vbcast.lane.b32.xlu1 %v314_v24, 264  ;;  %316 = vbcast.lane.b32.xlu0 %v314_v24, 256 }
  0x6b   : > { %331 = vbcast.lane.b32.xlu1 %v325_v25, 264  ;;  %327 = vbcast.lane.b32.xlu0 %v325_v25, 256 }
  0x6f   : > { %342 = vbcast.lane.b32.xlu1 %v336_v26, 264  ;;  %338 = vbcast.lane.b32.xlu0 %v336_v26, 256 }
  0x73   : > { %353 = vbcast.lane.b32.xlu1 %v347_v27, 264  ;;  %349 = vbcast.lane.b32.xlu0 %v347_v27, 256  ;;  %v589_v27 = vrot.slane %v175_v52, %v4200_v13 }
  0x77   : > { %364 = vbcast.lane.b32.xlu1 %v358_v29, 264  ;;  %360 = vbcast.lane.b32.xlu0 %v358_v29, 256  ;;  %v4292_v29 = vsub.s32 %v951_v22, %v4176_v1  ;;  %v655_v22 = vrot.slane %v176_v48, %v4192_v9 }
  0x7b   : > { %375 = vbcast.lane.b32.xlu1 %v369_v30, 264  ;;  %371 = vbcast.lane.b32.xlu0 %v369_v30, 256 }
  0x7f   : > { %386 = vbcast.lane.b32.xlu1 %v380_v31, 264  ;;  %382 = vbcast.lane.b32.xlu0 %v380_v31, 256 }
  0x83   : > { %397 = vbcast.lane.b32.xlu1 %v391_v32, 264  ;;  %393 = vbcast.lane.b32.xlu0 %v391_v32, 256 }
  0x87   : > { %408 = vbcast.lane.b32.xlu1 %v402_v33, 264  ;;  %404 = vbcast.lane.b32.xlu0 %v402_v33, 256 }
  0x8b   : > { %419 = vbcast.lane.b32.xlu1 %v413_v34, 264  ;;  %415 = vbcast.lane.b32.xlu0 %v413_v34, 256 }
  0x8f   : > { %430 = vbcast.lane.b32.xlu1 %v424_v35, 264  ;;  %426 = vbcast.lane.b32.xlu0 %v424_v35, 256 }
  0x93   : > { %441 = vbcast.lane.b32.xlu1 %v435_v36, 264  ;;  %437 = vbcast.lane.b32.xlu0 %v435_v36, 256  ;;  %v600_v36 = vrot.slane %v175_v52, %v4204_v15 }
  0x97   : > { %452 = vbcast.lane.b32.xlu1 %v446_v38, 264  ;;  %448 = vbcast.lane.b32.xlu0 %v446_v38, 256 }
  0x9b   : > { %463 = vbcast.lane.b32.xlu1 %v457_v39, 264  ;;  %459 = vbcast.lane.b32.xlu0 %v457_v39, 256 }
  0x9f   : > { %474 = vbcast.lane.b32.xlu1 %v468_v40, 264  ;;  %470 = vbcast.lane.b32.xlu0 %v468_v40, 256 }
  0xa3   : > { %485 = vbcast.lane.b32.xlu1 %v479_v41, 264  ;;  %481 = vbcast.lane.b32.xlu0 %v479_v41, 256 }
  0xa7   : > { %496 = vbcast.lane.b32.xlu1 %v490_v42, 264  ;;  %492 = vbcast.lane.b32.xlu0 %v490_v42, 256  ;;  %v611_v42 = vrot.slane %v175_v52, %v4208_v17 }
  0xa9   : > { %v4236_v44 = vpop.permute.xlu1 %195  ;;  %v4238_v45 = vpop.permute.xlu0 %184 }
  0xab   : > { %507 = vbcast.lane.b32.xlu1 %v501_v43, 264  ;;  %503 = vbcast.lane.b32.xlu0 %v501_v43, 256 }
  0xad   : > { %v4241_v49 = vpop.permute.xlu1 %199  ;;  %v4243_v50 = vpop.permute.xlu0 %188 }
  0xae   : > { %6496 = vst [vmem:[#allocation8_spill] sm:$0xff] %v4241_v49  ;;  %6497 = vst [vmem:[#allocation9_spill] sm:$0xff] %v4243_v50 }
  0xaf   : > { %518 = vbcast.lane.b32.xlu1 %v512_v46, 264  ;;  %514 = vbcast.lane.b32.xlu0 %v512_v46, 256 }
  0xb1   : > { %v4247_v54 = vpop.permute.xlu1 %210  ;;  %v4249_v55 = vpop.permute.xlu0 %206 }
  0xb2   : > { %6498 = vst [vmem:[#allocation10_spill] sm:$0xff] %v4247_v54  ;;  %v883_v58 = vcombine.low %v4238_v45, %v4249_v55 }
  0xb3   : > { %529 = vbcast.lane.b32.xlu1 %v523_v51, 264  ;;  %525 = vbcast.lane.b32.xlu0 %v523_v51, 256 }
  0xb4   : > { %v891_v0 = vrot.slane %v883_v58, %v4253_v57 }
  0xb5   : > { %v4257_v59 = vpop.permute.xlu1 %221  ;;  %v4259_v60 = vpop.permute.xlu0 %217 }
  0xb6   : > { %6499 = vst [vmem:[#allocation11_spill] sm:$0xff] %v4257_v59  ;;  %v899_v61 = vcombine.low %v4236_v44, %v4259_v60 }
  0xb7   : > { %540 = vbcast.lane.b32.xlu1 %v534_v56, 264  ;;  %536 = vbcast.lane.b32.xlu0 %v534_v56, 256  ;;  %v622_v56 = vrot.slane %v176_v48, %v4182_v3 }
  0xb8   : > { %v907_v63 = vrot.slane %v899_v61, %v4253_v57 }
  0xb9   : > { %v4266_v4 = vpop.permute.xlu1 %232  ;;  %v4268_v5 = vpop.permute.xlu0 %228 }
  0xba   : > { %6500 = vst [vmem:[#allocation12_spill] sm:$0xff] %v4266_v4  ;;  %v948_v6 = vcombine.high %v891_v0, %v907_v63  ;;  %v947_v30 = vcombine.low %v891_v0, %v907_v63  ;;  %v633_v63 = vrot.slane %v176_v48, %v4179_v2 }
  0xbb   : > { %551 = vbcast.lane.b32.xlu1 %v545_v62, 264  ;;  %547 = vbcast.lane.b32.xlu0 %v545_v62, 256 }
  0xbc   : > { %v4305_v1 = vrot.slane %v947_v30, %v4292_v29  ;;  %v4311_v40 = vrot.slane %v948_v6, %v4292_v29 }
  0xbd   : > { %v4271_v10 = vpop.permute.xlu1 %243  ;;  %v4273_v12 = vpop.permute.xlu0 %239 }
  0xbe   : > { %6501 = vst [vmem:[#allocation13_spill] sm:$0xff] %v4271_v10  ;;  %6508 = vst [vmem:[#allocation20_spill] sm:$0xff] %v4305_v1 }
  0xbf   : > { %562 = vbcast.lane.b32.xlu1 %v556_v8, 264  ;;  %558 = vbcast.lane.b32.xlu0 %v556_v8, 256 }
  0xc1   : > { %v4276_v19 = vpop.permute.xlu1 %254  ;;  %v4278_v20 = vpop.permute.xlu0 %250 }
  0xc2   : > { %6502 = vst [vmem:[#allocation14_spill] sm:$0xff] %v4276_v19  ;;  %v915_v23 = vcombine.low %v4268_v5, %v4278_v20 }
  0xc3   : > { %573 = vbcast.lane.b32.xlu1 %v567_v14, 264  ;;  %569 = vbcast.lane.b32.xlu0 %v567_v14, 256 }
  0xc4   : > { %v923_v31 = vrot.slane %v915_v23, %v4253_v57 }
  0xc5   : > { %v4283_v24 = vpop.permute.xlu1 %265  ;;  %v4285_v25 = vpop.permute.xlu0 %261 }
  0xc6   : > { %6503 = vst [vmem:[#allocation15_spill] sm:$0xff] %v4283_v24  ;;  %v931_v26 = vcombine.low %v4273_v12, %v4285_v25 }
  0xc7   : > { %584 = vbcast.lane.b32.xlu1 %v578_v21, 264  ;;  %580 = vbcast.lane.b32.xlu0 %v578_v21, 256 }
  0xc8   : > { %v939_v28 = vrot.slane %v931_v26, %v4253_v57 }
  0xc9   : > { %v4295_v32 = vpop.permute.xlu1 %276  ;;  %v4297_v33 = vpop.permute.xlu0 %272 }
  0xca   : > { %6504 = vst [vmem:[#allocation16_spill] sm:$0xff] %v4295_v32  ;;  %6505 = vst [vmem:[#allocation17_spill] sm:$0xff] %v4297_v33  ;;  %v979_v34 = vcombine.low %v923_v31, %v939_v28  ;;  %v980_v35 = vcombine.high %v923_v31, %v939_v28 }
  0xcb   : > { %595 = vbcast.lane.b32.xlu1 %v589_v27, 264  ;;  %591 = vbcast.lane.b32.xlu0 %v589_v27, 256  ;;  %v666_v27 = vrot.slane %v176_v48, %v4196_v11 }
  0xcc   : > { %v4308_v39 = vrot.slane %v979_v34, %v4292_v29  ;;  %v4314_v41 = vrot.slane %v980_v35, %v4292_v29  ;;  %v677_v34 = vrot.slane %v176_v48, %v4200_v13 }
  0xcd   : > { %v4300_v37 = vpop.permute.xlu1 %287  ;;  %v4302_v38 = vpop.permute.xlu0 %283 }
  0xce   : > { %6506 = vst [vmem:[#allocation18_spill] sm:$0xff] %v4300_v37  ;;  %6507 = vst [vmem:[#allocation19_spill] sm:$0xff] %v4302_v38 }
  0xcf   : > { %6509 = vst [vmem:[#allocation21_spill] sm:$0xff] %v4308_v39  ;;  %606 = vbcast.lane.b32.xlu1 %v600_v36, 264  ;;  %602 = vbcast.lane.b32.xlu0 %v600_v36, 256 }
  0xd1   : > { %v4324_v51 = vpop.permute.xlu1 %298  ;;  %v4326_v53 = vpop.permute.xlu0 %294 }
  0xd2   : > { %6510 = vst [vmem:[#allocation22_spill] sm:$0xff] %v4324_v51  ;;  %6511 = vst [vmem:[#allocation23_spill] sm:$0xff] %v4326_v53  ;;  %v1019_v52 = vcombine.low %v4297_v33, %v4326_v53 }
  0xd3   : > { %617 = vbcast.lane.b32.xlu1 %v611_v42, 264  ;;  %613 = vbcast.lane.b32.xlu0 %v611_v42, 256 }
  0xd4   : > { %v1027_v6 = vrot.slane %v1019_v52, %v4253_v57 }
  0xd5   : > { %v4331_v58 = vpop.permute.xlu0 %305  ;;  %v4333_v61 = vpop.permute.xlu1 %309 }
  0xd6   : > { %6512 = vst [vmem:[#allocation24_spill] sm:$0xff] %v4331_v58  ;;  %6513 = vst [vmem:[#allocation25_spill] sm:$0xff] %v4333_v61  ;;  %v1035_v62 = vcombine.low %v4302_v38, %v4331_v58 }
  0xd7   : > { %628 = vbcast.lane.b32.xlu1 %v622_v56, 264  ;;  %624 = vbcast.lane.b32.xlu0 %v622_v56, 256 }
  0xd8   : > { %v1043_v0 = vrot.slane %v1035_v62, %v4253_v57 }
  0xd9   : > { %v4340_v8 = vpop.permute.xlu0 %316  ;;  %v4343_v18 = vpop.permute.xlu1 %320 }
  0xda   : > { %6514 = vst [vmem:[#allocation26_spill] sm:$0xff] %v4340_v8  ;;  %v1084_v14 = vcombine.high %v1027_v6, %v1043_v0  ;;  %6515 = vst [vmem:[#allocation27_spill] sm:$0xff] %v4343_v18  ;;  %v1083_v42 = vcombine.low %v1027_v6, %v1043_v0 }
  0xdb   : > { %639 = vbcast.lane.b32.xlu1 %v633_v63, 264  ;;  %635 = vbcast.lane.b32.xlu0 %v633_v63, 256 }
  0xdc   : > { %v4370_v47 = vrot.slane %v1083_v42, %v4292_v29  ;;  %v4376_v0 = vrot.slane %v1084_v14, %v4292_v29  ;;  %v177_v14 = vld [vmem:[%s4170_s23 + $0x30] sm:$0xff] }
  0xdd   : > { %v4345_v21 = vpop.permute.xlu0 %327  ;;  %v4350_v26 = vpop.permute.xlu1 %331  ;;  %v765_v51 = vrot.slane %v177_v14, %v4200_v13 }
  0xde   : > { %6516 = vst [vmem:[#allocation28_spill] sm:$0xff] %v4345_v21  ;;  %6518 = vst [vmem:[#allocation30_spill] sm:$0xff] %v4350_v26 }
  0xdf   : > { %650 = vbcast.lane.b32.xlu1 %v644_v16, 264  ;;  %646 = vbcast.lane.b32.xlu0 %v644_v16, 256  ;;  %v688_v16 = vrot.slane %v176_v48, %v4204_v15  ;;  %6520 = vst [vmem:[#allocation32_spill] sm:$0xff] %v4370_v47 }
  0xe1   : > { %v4348_v23 = vpop.permute.xlu0 %338  ;;  %v4360_v35 = vpop.permute.xlu1 %342 }
  0xe2   : > { %6517 = vst [vmem:[#allocation29_spill] sm:$0xff] %v4348_v23  ;;  %v1051_v28 = vcombine.low %v4340_v8, %v4348_v23  ;;  %6519 = vst [vmem:[#allocation31_spill] sm:$0xff] %v4360_v35  ;;  %v743_v35 = vrot.slane %v177_v14, %v4192_v9 }
  0xe3   : > { %661 = vbcast.lane.b32.xlu1 %v655_v22, 264  ;;  %657 = vbcast.lane.b32.xlu0 %v655_v22, 256 }
  0xe4   : > { %v1059_v56 = vrot.slane %v1051_v28, %v4253_v57  ;;  %v699_v28 = vrot.slane %v176_v48, %v4208_v17 }
  0xe5   : > { %v4355_v30 = vpop.permute.xlu0 %349 }
  0xe6   : > { %v1067_v31 = vcombine.low %v4345_v21, %v4355_v30 }
  0xe7   : > { %672 = vbcast.lane.b32.xlu1 %v666_v27, 264  ;;  %668 = vbcast.lane.b32.xlu0 %v666_v27, 256  ;;  %v4381_v27 = vpop.permute.xlu1 %353 }
  0xe8   : > { %v1075_v36 = vrot.slane %v1067_v31, %v4253_v57  ;;  %6522 = vst [vmem:[#allocation34_spill] sm:$0xff] %v4381_v27  ;;  %v732_v27 = vrot.slane %v177_v14, %v4188_v7 }
  0xe9   : > { %v4364_v52 = vpop.permute.xlu0 %360 }
  0xea   : > { %v1115_v62 = vcombine.low %v1059_v56, %v1075_v36  ;;  %v1116_v63 = vcombine.high %v1059_v56, %v1075_v36 }
  0xeb   : > { %683 = vbcast.lane.b32.xlu1 %v677_v34, 264  ;;  %679 = vbcast.lane.b32.xlu0 %v677_v34, 256 }
  0xec   : > { %v4373_v31 = vrot.slane %v1115_v62, %v4292_v29  ;;  %v4379_v6 = vrot.slane %v1116_v63, %v4292_v29  ;;  %v710_v62 = vrot.slane %v177_v14, %v4182_v3  ;;  %v4394_v63 = vpop.permute.xlu1 %364 }
  0xed   : > { %v4367_v22 = vpop.permute.xlu0 %371  ;;  %6523 = vst [vmem:[#allocation35_spill] sm:$0xff] %v4394_v63 }
  0xee   : > { %6521 = vst [vmem:[#allocation33_spill] sm:$0xff] %v4373_v31 }
  0xef   : > { %694 = vbcast.lane.b32.xlu1 %v688_v16, 264  ;;  %690 = vbcast.lane.b32.xlu0 %v688_v16, 256  ;;  %v721_v16 = vrot.slane %v177_v14, %v4179_v2 }
  0xf0   : > { %v4407_v26 = vpop.permute.xlu1 %375 }
  0xf1   : > { %v4391_v56 = vpop.permute.xlu0 %382  ;;  %6524 = vst [vmem:[#allocation36_spill] sm:$0xff] %v4407_v26 }
  0xf2   : > { %v1427_v48 = vcombine.low %v4364_v52, %v4391_v56 }
  0xf3   : > { %705 = vbcast.lane.b32.xlu1 %v699_v28, 264  ;;  %701 = vbcast.lane.b32.xlu0 %v699_v28, 256 }
  0xf4   : > { %v1435_v46 = vrot.slane %v1427_v48, %v4253_v57  ;;  %v4413_v37 = vpop.permute.xlu1 %386 }
  0xf5   : > { %v4398_v34 = vpop.permute.xlu0 %393  ;;  %6525 = vst [vmem:[#allocation37_spill] sm:$0xff] %v4413_v37 }
  0xf6   : > { %v1443_v36 = vcombine.low %v4367_v22, %v4398_v34 }
  0xf7   : > { %716 = vbcast.lane.b32.xlu1 %v710_v62, 264  ;;  %712 = vbcast.lane.b32.xlu0 %v710_v62, 256  ;;  %v754_v62 = vrot.slane %v177_v14, %v4196_v11 }
  0xf8   : > { %v1451_v42 = vrot.slane %v1443_v36, %v4253_v57 }
  0xf9   : > { %v4405_v43 = vpop.permute.xlu0 %404 }
  0xfa   : > { %v1492_v28 = vcombine.high %v1435_v46, %v1451_v42  ;;  %v1491_v26 = vcombine.low %v1435_v46, %v1451_v42 }
  0xfb   : > { %727 = vbcast.lane.b32.xlu1 %v721_v16, 264  ;;  %723 = vbcast.lane.b32.xlu0 %v721_v16, 256  ;;  %v4422_v16 = vpop.permute.xlu1 %397 }
  0xfc   : > { %6526 = vst [vmem:[#allocation38_spill] sm:$0xff] %v4422_v16  ;;  %v776_v16 = vrot.slane %v177_v14, %v4204_v15  ;;  %v4437_v24 = vrot.slane %v1491_v26, %v4292_v29  ;;  %v4443_v46 = vrot.slane %v1492_v28, %v4292_v29 }
  0xfd   : > { %v4410_v18 = vpop.permute.xlu0 %415 }
  0xfe   : > { %6530 = vst [vmem:[#allocation42_spill] sm:$0xff] %v4437_v24 }
  0xff   : > { %738 = vbcast.lane.b32.xlu1 %v732_v27, 264  ;;  %734 = vbcast.lane.b32.xlu0 %v732_v27, 256  ;;  %v4432_v54 = vpop.permute.xlu1 %408 }
 0x100   : > { %6528 = vst [vmem:[#allocation40_spill] sm:$0xff] %v4432_v54 }
 0x101   : > { %v4415_v36 = vpop.permute.xlu0 %426 }
 0x102   : > { %v1459_v48 = vcombine.low %v4405_v43, %v4415_v36 }
 0x103   : > { %749 = vbcast.lane.b32.xlu1 %v743_v35, 264  ;;  %745 = vbcast.lane.b32.xlu0 %v743_v35, 256  ;;  %v4458_v28 = vpop.permute.xlu1 %419 }
 0x104   : > { %v1467_v63 = vrot.slane %v1459_v48, %v4253_v57  ;;  %6533 = vst [vmem:[#allocation45_spill] sm:$0xff] %v4458_v28 }
 0x105   : > { %v4420_v61 = vpop.permute.xlu0 %437 }
 0x106   : > { %v1475_v32 = vcombine.low %v4410_v18, %v4420_v61 }
 0x107   : > { %760 = vbcast.lane.b32.xlu1 %v754_v62, 264  ;;  %756 = vbcast.lane.b32.xlu0 %v754_v62, 256  ;;  %v4468_v26 = vpop.permute.xlu1 %430 }
 0x108   : > { %v1483_v27 = vrot.slane %v1475_v32, %v4253_v57  ;;  %6535 = vst [vmem:[#allocation47_spill] sm:$0xff] %v4468_v26 }
 0x109   : > { %v4429_v35 = vpop.permute.xlu0 %448 }
 0x10a   : > { %6527 = vst [vmem:[#allocation39_spill] sm:$0xff] %v4429_v35  ;;  %v1523_v37 = vcombine.low %v1467_v63, %v1483_v27  ;;  %v1524_v50 = vcombine.high %v1467_v63, %v1483_v27  ;;  %v787_v63 = vrot.slane %v177_v14, %v4208_v17 }
 0x10b   : > { %771 = vbcast.lane.b32.xlu1 %v765_v51, 264  ;;  %767 = vbcast.lane.b32.xlu0 %v765_v51, 256  ;;  %v4477_v19 = vpop.permute.xlu1 %441 }
 0x10c   : > { %v4440_v32 = vrot.slane %v1523_v37, %v4292_v29  ;;  %v4446_v42 = vrot.slane %v1524_v50, %v4292_v29  ;;  %v178_v37 = vld [vmem:[%s4170_s23 + $0x38] sm:$0xff]  ;;  %6538 = vst [vmem:[#allocation50_spill] sm:$0xff] %v4477_v19  ;;  %s166_s23 = scalar_lea.vmem [#allocation5], %s3845_s17 }
 0x10d   : > { %v4434_v10 = vpop.permute.xlu0 %459  ;;  %v798_v50 = vrot.slane %v178_v37, %v4182_v3  ;;  %v820_v54 = vrot.slane %v178_v37, %v4188_v7  ;;  %s3743_s17 = sshll.u32 %s166_s23, 4  ;;  %s6329_s17 = int_to_ptr.vmem [resolvable:$true] %s3743_s17 }
 0x10e   : > { %6529 = vst [vmem:[#allocation41_spill] sm:$0xff] %v4434_v10  ;;  %6531 = vst [vmem:[#allocation43_spill] sm:$0xff] %v4440_v32 }
 0x10f   : > { %782 = vbcast.lane.b32.xlu1 %v776_v16, 264  ;;  %778 = vbcast.lane.b32.xlu0 %v776_v16, 256  ;;  %v809_v16 = vrot.slane %v178_v37, %v4179_v2  ;;  %v831_v2 = vrot.slane %v178_v37, %v4192_v9  ;;  %v853_v9 = vrot.slane %v178_v37, %v4200_v13 }
 0x111   : > { %v4456_v48 = vpop.permute.xlu0 %470 }
 0x112   : > { %6532 = vst [vmem:[#allocation44_spill] sm:$0xff] %v4456_v48  ;;  %v1563_v14 = vcombine.low %v4429_v35, %v4456_v48  ;;  %v864_v35 = vrot.slane %v178_v37, %v4204_v15 }
 0x113   : > { %793 = vbcast.lane.b32.xlu1 %v787_v63, 264  ;;  %789 = vbcast.lane.b32.xlu0 %v787_v63, 256 }
 0x114   : > { %v1571_v28 = vrot.slane %v1563_v14, %v4253_v57 }
 0x115   : > { %v4463_v27 = vpop.permute.xlu0 %481 }
 0x116   : > { %6534 = vst [vmem:[#allocation46_spill] sm:$0xff] %v4463_v27  ;;  %v1579_v62 = vcombine.low %v4434_v10, %v4463_v27 }
 0x117   : > { %804 = vbcast.lane.b32.xlu1 %v798_v50, 264  ;;  %800 = vbcast.lane.b32.xlu0 %v798_v50, 256  ;;  %v4483_v50 = vpop.permute.xlu1 %452 }
 0x118   : > { %v1587_v51 = vrot.slane %v1579_v62, %v4253_v57  ;;  %v842_v62 = vrot.slane %v178_v37, %v4196_v11  ;;  %6540 = vst [vmem:[#allocation52_spill] sm:$0xff] %v4483_v50 }
 0x119   : > { %v4472_v3 = vpop.permute.xlu0 %492 }
 0x11a   : > { %6536 = vst [vmem:[#allocation48_spill] sm:$0xff] %v4472_v3  ;;  %v1628_v63 = vcombine.high %v1571_v28, %v1587_v51  ;;  %v1627_v19 = vcombine.low %v1571_v28, %v1587_v51 }
 0x11b   : > { %815 = vbcast.lane.b32.xlu1 %v809_v16, 264  ;;  %811 = vbcast.lane.b32.xlu0 %v809_v16, 256 }
 0x11c   : > { %v4500_v48 = vrot.slane %v1627_v19, %v4292_v29  ;;  %v4506_v51 = vrot.slane %v1628_v63, %v4292_v29  ;;  %v1556_v19 = vcombine.high %v4437_v24, %v4440_v32 }
 0x11d   : > { %v4475_v4 = vpop.permute.xlu0 %503 }
 0x11e   : > { %6537 = vst [vmem:[#allocation49_spill] sm:$0xff] %v4475_v4  ;;  %6543 = vst [vmem:[#allocation55_spill] sm:$0xff] %v4500_v48 }
 0x11f   : > { %826 = vbcast.lane.b32.xlu1 %v820_v54, 264  ;;  %822 = vbcast.lane.b32.xlu0 %v820_v54, 256 }
 0x121   : > { %v4480_v26 = vpop.permute.xlu0 %514 }
 0x122   : > { %6539 = vst [vmem:[#allocation51_spill] sm:$0xff] %v4480_v26  ;;  %v1595_v7 = vcombine.low %v4472_v3, %v4480_v26 }
 0x123   : > { %837 = vbcast.lane.b32.xlu1 %v831_v2, 264  ;;  %833 = vbcast.lane.b32.xlu0 %v831_v2, 256  ;;  %v4496_v2 = vpop.permute.xlu1 %463 }
 0x124   : > { %v1603_v11 = vrot.slane %v1595_v7, %v4253_v57  ;;  %6542 = vst [vmem:[#allocation54_spill] sm:$0xff] %v4496_v2  ;;  %v875_v7 = vrot.slane %v178_v37, %v4208_v17  ;;  %v1148_v17 = vcombine.high %v4370_v47, %v4373_v31 }
 0x125   : > { %v4487_v14 = vpop.permute.xlu0 %525 }
 0x126   : > { %6541 = vst [vmem:[#allocation53_spill] sm:$0xff] %v4487_v14  ;;  %v1611_v16 = vcombine.low %v4475_v4, %v4487_v14 }
 0x127   : > { %848 = vbcast.lane.b32.xlu1 %v842_v62, 264  ;;  %844 = vbcast.lane.b32.xlu0 %v842_v62, 256 }
 0x128   : > { %v1619_v54 = vrot.slane %v1611_v16, %v4253_v57  ;;  %v4520_v16 = vpop.permute.xlu1 %474 }
 0x129   : > { %v4494_v49 = vpop.permute.xlu0 %536  ;;  %6545 = vst [vmem:[#allocation57_spill] sm:$0xff] %v4520_v16 }
 0x12a   : > { %v1659_v50 = vcombine.low %v1603_v11, %v1619_v54  ;;  %v1660_v59 = vcombine.high %v1603_v11, %v1619_v54  ;;  %v1012_v54 = vcombine.high %v4305_v1, %v4308_v39 }
 0x12b   : > { %859 = vbcast.lane.b32.xlu1 %v853_v9, 264  ;;  %855 = vbcast.lane.b32.xlu0 %v853_v9, 256 }
 0x12c   : > { %v4503_v13 = vrot.slane %v1659_v50, %v4292_v29  ;;  %v4509_v28 = vrot.slane %v1660_v59, %v4292_v29  ;;  %v4528_v37 = vpop.permute.xlu1 %485 }
 0x12d   : > { %v4511_v62 = vpop.permute.xlu0 %547  ;;  %6546 = vst [vmem:[#allocation58_spill] sm:$0xff] %v4528_v37 }
 0x12e   : > { %6544 = vst [vmem:[#allocation56_spill] sm:$0xff] %v4503_v13  ;;  %v1692_v15 = vcombine.high %v4500_v48, %v4503_v13 }
 0x12f   : > { %870 = vbcast.lane.b32.xlu1 %v864_v35, 264  ;;  %866 = vbcast.lane.b32.xlu0 %v864_v35, 256 }
 0x130   : > { %v4547_v47 = vpop.permute.xlu1 %496 }
 0x131   : > { %v4522_v63 = vpop.permute.xlu0 %558  ;;  %6547 = vst [vmem:[#allocation59_spill] sm:$0xff] %v4547_v47 }
 0x132   : > { %v1971_v59 = vcombine.low %v4494_v49, %v4522_v63 }
 0x133   : > { %881 = vbcast.lane.b32.xlu1 %v875_v7, 264  ;;  %877 = vbcast.lane.b32.xlu0 %v875_v7, 256 }
 0x134   : > { %v1979_v11 = vrot.slane %v1971_v59, %v4253_v57  ;;  %v4552_v59 = vpop.permute.xlu1 %507 }
 0x135   : > { %v4530_v9 = vpop.permute.xlu0 %569  ;;  %6548 = vst [vmem:[#allocation60_spill] sm:$0xff] %v4552_v59 }
 0x136   : > { %v1987_v35 = vcombine.low %v4511_v62, %v4530_v9 }
 0x137   : > { %3069 = vrot.lane.b32.xlu1 %v1148_v17, %s4052_s18  ;;  %3067 = vrot.lane.b32.xlu0 %v1012_v54, %s4052_s18 }
 0x138   : > { %v1995_v7 = vrot.slane %v1987_v35, %v4253_v57  ;;  %v4562_v32 = vpop.permute.xlu1 %518 }
 0x139   : > { %v4542_v50 = vpop.permute.xlu0 %580  ;;  %6549 = vst [vmem:[#allocation61_spill] sm:$0xff] %v4562_v32 }
 0x13a   : > { %v2036_v31 = vcombine.high %v1979_v11, %v1995_v7 }
 0x13b   : > { %3073 = vrot.lane.b32.xlu1 %v1692_v15, %s4052_s18  ;;  %3071 = vrot.lane.b32.xlu0 %v1556_v19, %s4052_s18  ;;  %v2035_v15 = vcombine.low %v1979_v11, %v1995_v7 }
 0x13c   : > { %v4575_v37 = vrot.slane %v2036_v31, %v4292_v29  ;;  %v4580_v11 = vpop.permute.xlu1 %529 }
 0x13d   : > { %v4550_v17 = vpop.permute.xlu0 %591  ;;  %v4569_v47 = vrot.slane %v2035_v15, %v4292_v29  ;;  %6553 = vst [vmem:[#allocation65_spill] sm:$0xff] %v4580_v11 }
 0x13f   : > { %6551 = vst [vmem:[#allocation63_spill] sm:$0xff] %v4569_v47 }
 0x141   : > { %v4554_v54 = vpop.permute.xlu0 %602 }
 0x142   : > { %v2003_v35 = vcombine.low %v4542_v50, %v4554_v54 }
 0x144   : > { %v2011_v24 = vrot.slane %v2003_v35, %v4253_v57  ;;  %v4595_v35 = vpop.permute.xlu1 %540 }
 0x145   : > { %v4558_v13 = vpop.permute.xlu0 %613  ;;  %6556 = vst [vmem:[#allocation68_spill] sm:$0xff] %v4595_v35 }
 0x146   : > { %v2019_v48 = vcombine.low %v4550_v17, %v4558_v13 }
 0x148   : > { %v2027_v19 = vrot.slane %v2019_v48, %v4253_v57  ;;  %v4605_v16 = vpop.permute.xlu1 %551 }
 0x149   : > { %v4566_v39 = vpop.permute.xlu0 %624  ;;  %6558 = vst [vmem:[#allocation70_spill] sm:$0xff] %v4605_v16 }
 0x14a   : > { %6550 = vst [vmem:[#allocation62_spill] sm:$0xff] %v4566_v39  ;;  %v2067_v1 = vcombine.low %v2011_v24, %v2027_v19  ;;  %v2068_v59 = vcombine.high %v2011_v24, %v2027_v19 }
 0x14c   : > { %v4572_v2 = vrot.slane %v2067_v1, %v4292_v29  ;;  %v4578_v32 = vrot.slane %v2068_v59, %v4292_v29 }
 0x14d   : > { %v4582_v7 = vpop.permute.xlu0 %635 }
 0x14e   : > { %6552 = vst [vmem:[#allocation64_spill] sm:$0xff] %v4572_v2  ;;  %6554 = vst [vmem:[#allocation66_spill] sm:$0xff] %v4582_v7  ;;  %v2100_v48 = vcombine.high %v4569_v47, %v4572_v2  ;;  %v4611_v47 = vpop.permute.xlu1 %562 }
 0x14f   : > { %6561 = vst [vmem:[#allocation73_spill] sm:$0xff] %v4611_v47 }
 0x150   : > { %3075 = vrot.lane.b32.xlu0 %v2100_v48, %s4052_s18 }
 0x151   : > { %v4593_v59 = vpop.permute.xlu0 %646 }
 0x152   : > { %6555 = vst [vmem:[#allocation67_spill] sm:$0xff] %v4593_v59  ;;  %v2107_v15 = vcombine.low %v4566_v39, %v4593_v59  ;;  %v4617_v59 = vpop.permute.xlu1 %573 }
 0x153   : > { %6563 = vst [vmem:[#allocation75_spill] sm:$0xff] %v4617_v59 }
 0x154   : > { %v2115_v11 = vrot.slane %v2107_v15, %v4253_v57 }
 0x155   : > { %v4599_v19 = vpop.permute.xlu0 %657 }
 0x156   : > { %6557 = vst [vmem:[#allocation69_spill] sm:$0xff] %v4599_v19  ;;  %v2123_v24 = vcombine.low %v4582_v7, %v4599_v19  ;;  %v4627_v10 = vpop.permute.xlu1 %584 }
 0x157   : > { %6565 = vst [vmem:[#allocation77_spill] sm:$0xff] %v4627_v10 }
 0x158   : > { %v2131_v1 = vrot.slane %v2123_v24, %v4253_v57 }
 0x159   : > { %v4607_v31 = vpop.permute.xlu0 %668 }
 0x15a   : > { %6559 = vst [vmem:[#allocation71_spill] sm:$0xff] %v4607_v31  ;;  %v2172_v48 = vcombine.high %v2115_v11, %v2131_v1  ;;  %v2171_v15 = vcombine.low %v2115_v11, %v2131_v1 }
 0x15d   : > { %v4609_v2 = vpop.permute.xlu0 %679 }
 0x15e   : > { %6560 = vst [vmem:[#allocation72_spill] sm:$0xff] %v4609_v2 }
 0x161   : > { %v4613_v35 = vpop.permute.xlu0 %690 }
 0x162   : > { %6562 = vst [vmem:[#allocation74_spill] sm:$0xff] %v4613_v35  ;;  %v2139_v39 = vcombine.low %v4607_v31, %v4613_v35  ;;  %v4630_v31 = vrot.slane %v2171_v15, %v4292_v29  ;;  %v4636_v35 = vrot.slane %v2172_v48, %v4292_v29  ;;  %v4652_v48 = vpop.permute.xlu1 %595 }
 0x163   : > { %6568 = vst [vmem:[#allocation80_spill] sm:$0xff] %v4652_v48 }
 0x164   : > { %v2147_v16 = vrot.slane %v2139_v39, %v4253_v57  ;;  %6566 = vst [vmem:[#allocation78_spill] sm:$0xff] %v4630_v31 }
 0x165   : > { %v4619_v7 = vpop.permute.xlu0 %701 }
 0x166   : > { %6564 = vst [vmem:[#allocation76_spill] sm:$0xff] %v4619_v7  ;;  %v2155_v24 = vcombine.low %v4609_v2, %v4619_v7  ;;  %v4658_v15 = vpop.permute.xlu1 %606 }
 0x167   : > { %6569 = vst [vmem:[#allocation81_spill] sm:$0xff] %v4658_v15 }
 0x168   : > { %v2163_v19 = vrot.slane %v2155_v24, %v4253_v57 }
 0x169   : > { %v4625_v3 = vpop.permute.xlu0 %712 }
 0x16a   : > { %v2203_v47 = vcombine.low %v2147_v16, %v2163_v19  ;;  %v2204_v26 = vcombine.high %v2147_v16, %v2163_v19  ;;  %v4662_v2 = vpop.permute.xlu1 %617 }
 0x16b   : > { %6570 = vst [vmem:[#allocation82_spill] sm:$0xff] %v4662_v2 }
 0x16c   : > { %v4633_v59 = vrot.slane %v2203_v47, %v4292_v29  ;;  %v4639_v11 = vrot.slane %v2204_v26, %v4292_v29 }
 0x16d   : > { %v4641_v39 = vpop.permute.xlu0 %723 }
 0x16e   : > { %6567 = vst [vmem:[#allocation79_spill] sm:$0xff] %v4633_v59  ;;  %v2236_v1 = vcombine.high %v4630_v31, %v4633_v59  ;;  %v4672_v59 = vpop.permute.xlu1 %628 }
 0x16f   : > { %6571 = vst [vmem:[#allocation83_spill] sm:$0xff] %v4672_v59 }
 0x170   : > { %3077 = vrot.lane.b32.xlu1 %v2236_v1, %s4052_s18 }
 0x171   : > { %v4654_v26 = vpop.permute.xlu0 %734 }
 0x172   : > { %v2515_v1 = vcombine.low %v4625_v3, %v4654_v26  ;;  %v4684_v33 = vpop.permute.xlu1 %639 }
 0x173   : > { %6572 = vst [vmem:[#allocation84_spill] sm:$0xff] %v4684_v33 }
 0x174   : > { %v2523_v2 = vrot.slane %v2515_v1, %v4253_v57 }
 0x175   : > { %v4656_v24 = vpop.permute.xlu0 %745 }
 0x176   : > { %v2531_v19 = vcombine.low %v4641_v39, %v4656_v24  ;;  %v4698_v8 = vpop.permute.xlu1 %650 }
 0x177   : > { %6575 = vst [vmem:[#allocation87_spill] sm:$0xff] %v4698_v8  ;;  %v884_v8 = vcombine.high %v4238_v45, %v4249_v55 }
 0x178   : > { %v2539_v31 = vrot.slane %v2531_v19, %v4253_v57 }
 0x179   : > { %v4660_v10 = vpop.permute.xlu0 %756 }
 0x17a   : > { %v2579_v27 = vcombine.low %v2523_v2, %v2539_v31  ;;  %v2580_v21 = vcombine.high %v2523_v2, %v2539_v31 }
 0x17c   : > { %v4689_v53 = vrot.slane %v2579_v27, %v4292_v29  ;;  %v6576_v27 = vcombine.low %v4311_v40, %v4314_v41 }
 0x17d   : > { %v4664_v16 = vpop.permute.xlu0 %767 }
 0x17e   : > { %6573 = vst [vmem:[#allocation85_spill] sm:$0xff] %v4689_v53 }
 0x181   : > { %v4668_v47 = vpop.permute.xlu0 %778 }
 0x182   : > { %v2547_v48 = vcombine.low %v4660_v10, %v4668_v47 }
 0x184   : > { %v2555_v4 = vrot.slane %v2547_v48, %v4253_v57 }
 0x185   : > { %v4677_v15 = vpop.permute.xlu0 %789 }
 0x186   : > { %v2563_v7 = vcombine.low %v4664_v16, %v4677_v15 }
 0x188   : > { %v2571_v14 = vrot.slane %v2563_v7, %v4253_v57  ;;  %v6578_v7 = vcombine.low %v4443_v46, %v4446_v42 }
 0x189   : > { %v4686_v59 = vpop.permute.xlu0 %800 }
 0x18a   : > { %v2611_v19 = vcombine.low %v2555_v4, %v2571_v14  ;;  %v2612_v23 = vcombine.high %v2555_v4, %v2571_v14 }
 0x18c   : > { %v4692_v38 = vrot.slane %v2611_v19, %v4292_v29  ;;  %v4709_v19 = vpop.permute.xlu1 %661 }
 0x18d   : > { %v4694_v1 = vpop.permute.xlu0 %811  ;;  %6577 = vst [vmem:[#allocation88_spill] sm:$0xff] %v4709_v19  ;;  %v2594_v19 = vrot.slane %v2580_v21, %v4292_v29 }
 0x18e   : > { %6574 = vst [vmem:[#allocation86_spill] sm:$0xff] %v4692_v38  ;;  %v2644_v58 = vcombine.high %v4689_v53, %v4692_v38  ;;  %v2626_v38 = vrot.slane %v2612_v23, %v4292_v29  ;;  %v932_v23 = vcombine.high %v4273_v12, %v4285_v25 }
 0x190   : > { %3079 = vrot.lane.b32.xlu0 %v2644_v58, %s4052_s18  ;;  %v4720_v53 = vpop.permute.xlu1 %672  ;;  %v2645_v14 = vcombine.low %v2594_v19, %v2626_v38 }
 0x191   : > { %v4703_v48 = vpop.permute.xlu0 %822  ;;  %6579 = vst [vmem:[#allocation89_spill] sm:$0xff] %v4720_v53  ;;  %v916_v53 = vcombine.high %v4268_v5, %v4278_v20  ;;  %v1476_v5 = vcombine.high %v4410_v18, %v4420_v61  ;;  %v1460_v61 = vcombine.high %v4405_v43, %v4415_v36  ;;  %v2020_v36 = vcombine.high %v4550_v17, %v4558_v13 }
 0x192   : > { %v2651_v21 = vcombine.low %v4686_v59, %v4703_v48 }
 0x194   : > { %3099 = vrot.lane.b32.xlu0 %v6576_v27, %s4053_s24  ;;  %v6580_v27 = vcombine.low %v4575_v37, %v4578_v32  ;;  %v4734_v31 = vpop.permute.xlu1 %683  ;;  %v4766_v55 = vrot.slane %v2651_v21, %v4253_v57 }
 0x195   : > { %v4711_v33 = vpop.permute.xlu0 %833  ;;  %6581 = vst [vmem:[#allocation90_spill] sm:$0xff] %v4734_v31 }
 0x196   : > { %v2667_v2 = vcombine.low %v4694_v1, %v4711_v33 }
 0x198   : > { %3103 = vrot.lane.b32.xlu0 %v6578_v7, %s4053_s24  ;;  %v4777_v18 = vpop.permute.xlu1 %694 }
 0x199   : > { %v4717_v58 = vpop.permute.xlu0 %844  ;;  %6583 = vst [vmem:[#allocation91_spill] sm:$0xff] %v4777_v18 }
 0x19c   : > { %3107 = vrot.lane.b32.xlu0 %v6580_v27, %s4053_s24  ;;  %v900_v27 = vcombine.high %v4236_v44, %v4259_v60  ;;  %v6582_v44 = vcombine.high %v4311_v40, %v4314_v41  ;;  %v4756_v60 = vrot.slane %v932_v23, %v4253_v57  ;;  %v4771_v40 = vrot.slane %v916_v53, %v4253_v57 }
 0x19d   : > { %v4727_v4 = vpop.permute.xlu0 %855  ;;  %v1444_v41 = vcombine.high %v4367_v22, %v4398_v34  ;;  %v6584_v53 = vcombine.high %v4443_v46, %v4446_v42  ;;  %v1428_v22 = vcombine.high %v4364_v52, %v4391_v56  ;;  %v4805_v46 = vrot.slane %v1460_v61, %v4253_v57 }
 0x19e   : > { %v4763_v45 = vrot.slane %v900_v27, %v4253_v57  ;;  %v995_v43 = vcombine.low %v4771_v40, %v4756_v60  ;;  %v1988_v42 = vcombine.high %v4511_v62, %v4530_v9  ;;  %v2004_v52 = vcombine.high %v4542_v50, %v4554_v54  ;;  %v4828_v9 = vpop.permute.xlu1 %705 }
 0x19f   : > { %v6585_v56 = vcombine.high %v4575_v37, %v4578_v32  ;;  %v1972_v50 = vcombine.high %v4494_v49, %v4522_v63  ;;  %6588 = vst [vmem:[#allocation94_spill] sm:$0xff] %v4828_v9  ;;  %v4832_v37 = vrot.slane %v2020_v36, %v4253_v57  ;;  %v2564_v54 = vcombine.high %v4664_v16, %v4677_v15 }
 0x1a0   : > { %3111 = vrot.lane.b32.xlu0 %v2645_v14, %s4053_s24  ;;  %v4747_v14 = vrot.slane %v2667_v2, %v4253_v57  ;;  %v4780_v2 = vrot.slane %v884_v8, %v4253_v57  ;;  %v4795_v8 = vrot.slane %v1476_v5, %v4253_v57  ;;  %v4822_v5 = vrot.slane %v1428_v22, %v4253_v57 }
 0x1a1   : > { %v4736_v7 = vpop.permute.xlu0 %866  ;;  %v1003_v32 = vrot.slane %v995_v43, %v4292_v29  ;;  %v4844_v49 = vrot.slane %v2004_v52, %v4253_v57  ;;  %v4857_v43 = vrot.slane %v1972_v50, %v4253_v57 }
 0x1a2   : > { %v2683_v12 = vcombine.low %v4717_v58, %v4736_v7  ;;  %v2715_v23 = vcombine.low %v4766_v55, %v4747_v14  ;;  %v963_v34 = vcombine.low %v4780_v2, %v4763_v45  ;;  %v1539_v62 = vcombine.low %v4805_v46, %v4795_v8 }
 0x1a3   : > { %v2083_v22 = vcombine.low %v4844_v49, %v4832_v37 }
 0x1a4   : > { %3131 = vrot.lane.b32.xlu0 %v6582_v44, %s4054_s25  ;;  %v2691_v27 = vrot.slane %v2683_v12, %v4253_v57  ;;  %v4802_v44 = vrot.slane %v1444_v41, %v4253_v57  ;;  %v4816_v13 = vrot.slane %v2715_v23, %v4292_v29  ;;  %v4841_v23 = vrot.slane %v1988_v42, %v4253_v57 }
 0x1a5   : > { %v4760_v20 = vpop.permute.xlu0 %877  ;;  %v971_v63 = vrot.slane %v963_v34, %v4292_v29 }
 0x1a6   : > { %v2699_v25 = vcombine.low %v4727_v4, %v4760_v20  ;;  %6586 = vst [vmem:[#allocation92_spill] sm:$0xff] %v4816_v13  ;;  %v1507_v61 = vcombine.low %v4822_v5, %v4802_v44  ;;  %v2051_v34 = vcombine.low %v4857_v43, %v4841_v23 }
 0x1a7   : > { %v1015_v15 = vcombine.low %v971_v63, %v1003_v32 }
 0x1a8   : > { %v2707_v21 = vrot.slane %v2699_v25, %v4253_v57  ;;  %3135 = vrot.lane.b32.xlu0 %v6584_v53, %s4054_s25  ;;  %v2646_v25 = vcombine.high %v2594_v19, %v2626_v38  ;;  %v2532_v53 = vcombine.high %v4641_v39, %v4656_v24  ;;  %v2548_v38 = vcombine.high %v4660_v10, %v4668_v47  ;;  %v4866_v47 = vpop.permute.xlu1 %716 }
 0x1a9   : > { %v1547_v19 = vrot.slane %v1539_v62, %v4292_v29  ;;  %v2516_v39 = vcombine.high %v4625_v3, %v4654_v26  ;;  %v4864_v10 = vrot.slane %v2564_v54, %v4253_v57  ;;  %6589 = vst [vmem:[#allocation95_spill] sm:$0xff] %v4866_v47  ;;  %v1515_v24 = vrot.slane %v1507_v61, %v4292_v29 }
 0x1aa   : > { %v2747_v12 = vcombine.low %v2691_v27, %v2707_v21  ;;  %v4872_v36 = vrot.slane %v2532_v53, %v4253_v57  ;;  %v6590_v3 = vcombine.low %v4376_v0, %v4379_v6  ;;  %v2091_v62 = vrot.slane %v2083_v22, %v4292_v29 }
 0x1ab   : > { %v1559_v26 = vcombine.low %v1515_v24, %v1547_v19  ;;  %v4883_v42 = vrot.slane %v2516_v39, %v4253_v57  ;;  %v2716_v54 = vcombine.high %v4766_v55, %v4747_v14  ;;  %v6593_v14 = vcombine.low %v4636_v35, %v4639_v11 }
 0x1ac   : > { %3139 = vrot.lane.b32.xlu0 %v6585_v56, %s4054_s25  ;;  %v4819_v17 = vrot.slane %v2747_v12, %v4292_v29  ;;  %v4875_v12 = vrot.slane %v2548_v38, %v4253_v57  ;;  %v2748_v56 = vcombine.high %v2691_v27, %v2707_v21  ;;  %v4898_v61 = vpop.permute.xlu1 %727 }
 0x1ad   : > { %v2595_v50 = vcombine.low %v4883_v42, %v4872_v36  ;;  %6592 = vst [vmem:[#allocation96_spill] sm:$0xff] %v4898_v61  ;;  %v2730_v38 = vrot.slane %v2716_v54, %v4292_v29 }
 0x1ae   : > { %6587 = vst [vmem:[#allocation93_spill] sm:$0xff] %v4819_v17  ;;  %v2780_v41 = vcombine.high %v4816_v13, %v4819_v17  ;;  %v2627_v52 = vcombine.low %v4875_v12, %v4864_v10  ;;  %v4904_v53 = vrot.slane %v2748_v56, %v4292_v29 }
 0x1af   : > { %v2603_v55 = vrot.slane %v2595_v50, %v4292_v29  ;;  %v6598_v50 = vld [vmem:[#allocation24_spill] sm:$0xff] }
 0x1b0   : > { %3143 = vrot.lane.b32.xlu0 %v2646_v25, %s4054_s25  ;;  %3081 = vrot.lane.b32.xlu1 %v2780_v41, %s4052_s18  ;;  %v6591_v25 = vcombine.low %v4506_v51, %v4509_v28  ;;  %v2059_v41 = vrot.slane %v2051_v34, %v4292_v29  ;;  %v4901_v21 = vrot.slane %v2627_v52, %v4292_v29  ;;  %v4915_v39 = vpop.permute.xlu1 %738  ;;  %v6595_v34 = vld [vmem:[#allocation28_spill] sm:$0xff]  ;;  %v6597_v52 = vld [vmem:[#allocation26_spill] sm:$0xff]  ;;  %s3853_s18 = sshll.u32 %s4037_s9, 10  ;;  %s4068_s9 = smov [#allocation5]  }
 0x1b1   : > { %v2781_v22 = vcombine.low %v2730_v38, %v4904_v53  ;;  %6594 = vst [vmem:[#allocation97_spill] sm:$0xff] %v4915_v39 }
 0x1b2   : > { %v2103_v27 = vcombine.low %v2059_v41, %v2091_v62 }
 0x1b4   : > { %3163 = vrot.lane.b32.xlu0 %v1015_v15, %s4055_s26  ;;  %3101 = vrot.lane.b32.xlu1 %v6590_v3, %s4053_s24  ;;  %v2647_v15 = vcombine.low %v2603_v55, %v4901_v21  ;;  %v1068_v3 = vcombine.high %v6595_v34, %v4355_v30  ;;  %v6600_v30 = vcombine.high %v4376_v0, %v4379_v6  ;;  %v6604_v34 = vld [vmem:[#allocation49_spill] sm:$0xff]  ;;  %v6606_v0 = vld [vmem:[#allocation46_spill] sm:$0xff] }
 0x1b5   : > { %v6607_v6 = vld [vmem:[#allocation41_spill] sm:$0xff] }
 0x1b6   : > { %v4928_v16 = vrot.slane %v1068_v3, %v4253_v57  ;;  %v1560_v3 = vcombine.high %v1515_v24, %v1547_v19  ;;  %v6611_v24 = vld [vmem:[#allocation44_spill] sm:$0xff] }
 0x1b8   : > { %3167 = vrot.lane.b32.xlu0 %v1559_v26, %s4055_s26  ;;  %3105 = vrot.lane.b32.xlu1 %v6591_v25, %s4053_s24  ;;  %v6596_v26 = vld [vmem:[#allocation29_spill] sm:$0xff]  ;;  %v1016_v25 = vcombine.high %v971_v63, %v1003_v32 }
 0x1b9   : > { %v1052_v56 = vcombine.high %v6597_v52, %v6596_v26  ;;  %v6603_v63 = vld [vmem:[#allocation53_spill] sm:$0xff]  ;;  %v4939_v52 = vpop.permute.xlu1 %749 }
 0x1ba   : > { %v1612_v26 = vcombine.high %v6604_v34, %v6603_v63  ;;  %6605 = vst [vmem:[#allocation28_spill] sm:$0xff] %v4939_v52  ;;  %v6613_v34 = vld [vmem:[#allocation76_spill] sm:$0xff] }
 0x1bc   : > { %3171 = vrot.lane.b32.xlu0 %v2103_v27, %s4055_s26  ;;  %3109 = vrot.lane.b32.xlu1 %v6593_v14, %s4053_s24  ;;  %v6599_v27 = vld [vmem:[#allocation19_spill] sm:$0xff]  ;;  %v996_v14 = vcombine.high %v4771_v40, %v4756_v60  ;;  %v964_v60 = vcombine.high %v4780_v2, %v4763_v45  ;;  %v4944_v40 = vrot.slane %v1052_v56, %v4253_v57 }
 0x1bd   : > { %v1036_v54 = vcombine.high %v6599_v27, %v6598_v50  ;;  %v1580_v50 = vcombine.high %v6607_v6, %v6606_v0  ;;  %v6608_v27 = vld [vmem:[#allocation51_spill] sm:$0xff]  ;;  %v6610_v45 = vcombine.high %v4506_v51, %v4509_v28  ;;  %v4969_v63 = vrot.slane %v1612_v26, %v4253_v57  ;;  %v6614_v0 = vld [vmem:[#allocation72_spill] sm:$0xff] }
 0x1be   : > { %v4961_v2 = vrot.slane %v996_v14, %v4292_v29  ;;  %v6612_v56 = vld [vmem:[#allocation39_spill] sm:$0xff]  ;;  %v2104_v6 = vcombine.high %v2059_v41, %v2091_v62  ;;  %v6620_v41 = vcombine.high %v4636_v35, %v4639_v11  ;;  %v2700_v11 = vcombine.high %v4727_v4, %v4760_v20 }
 0x1bf   : > { %v4979_v28 = vrot.slane %v1580_v50, %v4253_v57  ;;  %v2668_v4 = vcombine.high %v4694_v1, %v4711_v33  ;;  %v2684_v20 = vcombine.high %v4717_v58, %v4736_v7  ;;  %v2652_v7 = vcombine.high %v4686_v59, %v4703_v48 }
 0x1c0   : > { %3175 = vrot.lane.b32.xlu0 %v2647_v15, %s4055_s26  ;;  %3113 = vrot.lane.b32.xlu1 %v2781_v22, %s4053_s24  ;;  %v6601_v15 = vld [vmem:[#allocation23_spill] sm:$0xff]  ;;  %v6602_v22 = vld [vmem:[#allocation17_spill] sm:$0xff] }
 0x1c1   : > { %v1020_v32 = vcombine.high %v6602_v22, %v6601_v15  ;;  %v1131_v22 = vcombine.low %v4944_v40, %v4928_v16  ;;  %v5071_v59 = vrot.slane %v2684_v20, %v4253_v57  ;;  %v6627_v20 = vld [vmem:[#allocation14_spill] sm:$0xff] }
 0x1c3   : > { %v4964_v19 = vrot.slane %v1020_v32, %v4253_v57  ;;  %v6615_v32 = vld [vmem:[#allocation69_spill] sm:$0xff]  ;;  %v4998_v50 = vrot.slane %v1131_v22, %v4292_v29  ;;  %v2648_v22 = vcombine.high %v2603_v55, %v4901_v21 }
 0x1c4   : > { %3195 = vrot.lane.b32.xlu0 %v1016_v25, %s4056_s27  ;;  %3133 = vrot.lane.b32.xlu1 %v6600_v30, %s4054_s25  ;;  %v4947_v25 = vrot.slane %v1036_v54, %v4253_v57  ;;  %v6609_v30 = vld [vmem:[#allocation48_spill] sm:$0xff]  ;;  %v1564_v54 = vcombine.high %v6612_v56, %v6611_v24  ;;  %v6618_v24 = vld [vmem:[#allocation74_spill] sm:$0xff]  ;;  %v6619_v56 = vld [vmem:[#allocation71_spill] sm:$0xff] }
 0x1c5   : > { %v1596_v15 = vcombine.high %v6609_v30, %v6608_v27  ;;  %v4974_v27 = vrot.slane %v964_v60, %v4292_v29  ;;  %v6616_v30 = vld [vmem:[#allocation66_spill] sm:$0xff]  ;;  %v2140_v62 = vcombine.high %v6619_v56, %v6618_v24  ;;  %v2782_v24 = vcombine.high %v2730_v38, %v4904_v53 }
 0x1c6   : > { %v1099_v51 = vcombine.low %v4964_v19, %v4947_v25  ;;  %v2124_v26 = vcombine.high %v6616_v30, %v6615_v32  ;;  %v6622_v32 = vld [vmem:[#allocation62_spill] sm:$0xff] }
 0x1c7   : > { %v4982_v14 = vrot.slane %v1596_v15, %v4253_v57  ;;  %v1017_v60 = vcombine.low %v4974_v27, %v4961_v2  ;;  %v1540_v15 = vcombine.high %v4805_v46, %v4795_v8  ;;  %v1508_v8 = vcombine.high %v4822_v5, %v4802_v44 }
 0x1c8   : > { %3199 = vrot.lane.b32.xlu0 %v1560_v3, %s4056_s27  ;;  %3137 = vrot.lane.b32.xlu1 %v6610_v45, %s4054_s25  ;;  %v2156_v3 = vcombine.high %v6614_v0, %v6613_v34  ;;  %v4986_v45 = vpop.permute.xlu1 %760  ;;  %v5003_v34 = vrot.slane %v1564_v54, %v4253_v57  ;;  %v5021_v54 = vrot.slane %v2124_v26, %v4253_v57 }
 0x1c9   : > { %6617 = vst [vmem:[#allocation29_spill] sm:$0xff] %v4986_v45  ;;  %v1675_v0 = vcombine.low %v4982_v14, %v4969_v63  ;;  %v5024_v56 = vrot.slane %v1099_v51, %v4292_v29  ;;  %v2084_v44 = vcombine.high %v4844_v49, %v4832_v37  ;;  %v5042_v53 = vrot.slane %v1540_v15, %v4292_v29 }
 0x1ca   : > { %v5010_v35 = vrot.slane %v2156_v3, %v4253_v57  ;;  %v1643_v46 = vcombine.low %v5003_v34, %v4979_v28  ;;  %v5027_v3 = vrot.slane %v2140_v62, %v4253_v57  ;;  %v5055_v37 = vrot.slane %v2700_v11, %v4253_v57 }
 0x1cb   : > { %v1151_v21 = vcombine.low %v5024_v56, %v4998_v50  ;;  %v5045_v33 = vrot.slane %v1675_v0, %v4292_v29  ;;  %v2052_v49 = vcombine.high %v4857_v43, %v4841_v23  ;;  %v5060_v55 = vrot.slane %v1508_v8, %v4292_v29  ;;  %v6625_v8 = vld [vmem:[#allocation11_spill] sm:$0xff] }
 0x1cc   : > { %3203 = vrot.lane.b32.xlu0 %v2104_v6, %s4056_s27  ;;  %3141 = vrot.lane.b32.xlu1 %v6620_v41, %s4054_s25  ;;  %v6621_v6 = vld [vmem:[#allocation67_spill] sm:$0xff]  ;;  %v5037_v5 = vpop.permute.xlu1 %771  ;;  %v2219_v58 = vcombine.low %v5027_v3, %v5010_v35  ;;  %v5063_v38 = vrot.slane %v1643_v46, %v4292_v29  ;;  %v5068_v26 = vrot.slane %v2668_v4, %v4253_v57  ;;  %v6626_v46 = vld [vmem:[#allocation8_spill] sm:$0xff] }
 0x1cd   : > { %v2108_v30 = vcombine.high %v6622_v32, %v6621_v6  ;;  %6623 = vst [vmem:[#allocation26_spill] sm:$0xff] %v5037_v5  ;;  %v1561_v48 = vcombine.low %v5060_v55, %v5042_v53  ;;  %v5080_v43 = vrot.slane %v2084_v44, %v4292_v29  ;;  %v2628_v62 = vcombine.high %v4875_v12, %v4864_v10  ;;  %v6628_v44 = vld [vmem:[#allocation12_spill] sm:$0xff] }
 0x1ce   : > { %v1695_v23 = vcombine.low %v5063_v38, %v5045_v33  ;;  %v5085_v41 = vrot.slane %v2652_v7, %v4253_v57  ;;  %v5090_v15 = vrot.slane %v2219_v58, %v4292_v29  ;;  %v5095_v6 = vrot.slane %v2052_v49, %v4292_v29  ;;  %v6629_v58 = vld [vmem:[#allocation15_spill] sm:$0xff]  ;;  %v6630_v7 = vld [vmem:[#allocation13_spill] sm:$0xff] }
 0x1cf   : > { %v5048_v1 = vrot.slane %v2108_v30, %v4253_v57  ;;  %v2596_v32 = vcombine.high %v4883_v42, %v4872_v36  ;;  %v1171_v4 = vcombine.low %v6626_v46, %v6625_v8  ;;  %v1203_v49 = vcombine.low %v6630_v7, %v6629_v58  ;;  %v6637_v46 = vld [vmem:[#allocation36_spill] sm:$0xff] }
 0x1d0   : > { %3207 = vrot.lane.b32.xlu0 %v2648_v22, %s4056_s27  ;;  %3145 = vrot.lane.b32.xlu1 %v2782_v24, %s4054_s25  ;;  %v5092_v0 = vpop.permute.xlu1 %782  ;;  %v2731_v10 = vcombine.low %v5085_v41, %v5068_v26  ;;  %v2105_v30 = vcombine.low %v5095_v6, %v5080_v43  ;;  %v5108_v22 = vrot.slane %v2628_v62, %v4292_v29  ;;  %v6639_v7 = vld [vmem:[#allocation40_spill] sm:$0xff] }
 0x1d1   : > { %v2187_v51 = vcombine.low %v5048_v1, %v5021_v54  ;;  %6624 = vst [vmem:[#allocation24_spill] sm:$0xff] %v5092_v0  ;;  %v5116_v36 = vrot.slane %v2596_v32, %v4292_v29  ;;  %v1018_v13 = vcombine.high %v4974_v27, %v4961_v2 }
 0x1d2   : > { %v5119_v42 = vrot.slane %v2731_v10, %v4292_v29  ;;  %v5138_v10 = vrot.slane %v1171_v4, %v4253_v57  ;;  %v6636_v4 = vld [vmem:[#allocation38_spill] sm:$0xff] }
 0x1d3   : > { %v2195_v12 = vrot.slane %v2187_v51, %v4292_v29  ;;  %v1715_v8 = vcombine.low %v6637_v46, %v6636_v4  ;;  %v6650_v46 = vld [vmem:[#allocation80_spill] sm:$0xff] }
 0x1d4   : > { %3227 = vrot.lane.b32.xlu0 %v1017_v60, %s4057_s28  ;;  %3165 = vrot.lane.b32.xlu1 %v1151_v21, %s4055_s26  ;;  %v2763_v60 = vcombine.low %v5071_v59, %v5055_v37  ;;  %v1187_v21 = vcombine.low %v6628_v44, %v6627_v20  ;;  %v5127_v51 = vpop.permute.xlu1 %793  ;;  %v6641_v44 = vld [vmem:[#allocation45_spill] sm:$0xff] }
 0x1d5   : > { %v2239_v11 = vcombine.low %v2195_v12, %v5090_v15  ;;  %6631 = vst [vmem:[#allocation19_spill] sm:$0xff] %v5127_v51 }
 0x1d6   : > { %v5111_v24 = vrot.slane %v2763_v60, %v4292_v29  ;;  %v2649_v60 = vcombine.low %v5116_v36, %v5108_v22 }
 0x1d8   : > { %3231 = vrot.lane.b32.xlu0 %v1561_v48, %s4057_s28  ;;  %3169 = vrot.lane.b32.xlu1 %v1695_v23, %s4055_s26  ;;  %v6632_v48 = vld [vmem:[#allocation10_spill] sm:$0xff]  ;;  %v6633_v23 = vld [vmem:[#allocation9_spill] sm:$0xff]  ;;  %v2783_v32 = vcombine.low %v5119_v42, %v5111_v24 }
 0x1d9   : > { %v1155_v62 = vcombine.low %v6633_v23, %v6632_v48  ;;  %v6634_v23 = vld [vmem:[#allocation37_spill] sm:$0xff] }
 0x1db   : > { %v5147_v17 = vrot.slane %v1155_v62, %v4253_v57  ;;  %v5161_v62 = vpop.permute.xlu1 %804 }
 0x1dc   : > { %3235 = vrot.lane.b32.xlu0 %v2105_v30, %s4057_s28  ;;  %3173 = vrot.lane.b32.xlu1 %v2239_v11, %s4055_s26  ;;  %v5141_v30 = vrot.slane %v1187_v21, %v4253_v57  ;;  %v5144_v11 = vrot.slane %v1203_v49, %v4253_v57  ;;  %v6638_v21 = vld [vmem:[#allocation47_spill] sm:$0xff]  ;;  %v6640_v49 = vld [vmem:[#allocation50_spill] sm:$0xff]  ;;  %6642 = vst [vmem:[#allocation23_spill] sm:$0xff] %v5161_v62 }
 0x1dd   : > { %v1731_v58 = vcombine.low %v6639_v7, %v6638_v21  ;;  %v1747_v20 = vcombine.low %v6641_v44, %v6640_v49  ;;  %v1219_v2 = vcombine.low %v5147_v17, %v5138_v10  ;;  %v1562_v44 = vcombine.high %v5060_v55, %v5042_v53  ;;  %v6645_v21 = vld [vmem:[#allocation75_spill] sm:$0xff]  ;;  %v6646_v53 = vld [vmem:[#allocation70_spill] sm:$0xff] }
 0x1de   : > { %v1251_v27 = vcombine.low %v5141_v30, %v5144_v11  ;;  %v5181_v49 = vrot.slane %v1715_v8, %v4253_v57  ;;  %v2259_v55 = vcombine.low %v6646_v53, %v6645_v21 }
 0x1df   : > { %v5184_v7 = vrot.slane %v1731_v58, %v4253_v57  ;;  %v5199_v4 = vpop.permute.xlu1 %815 }
 0x1e0   : > { %3239 = vrot.lane.b32.xlu0 %v2649_v60, %s4057_s28  ;;  %3177 = vrot.lane.b32.xlu1 %v2783_v32, %s4055_s26  ;;  %v1152_v60 = vcombine.high %v5024_v56, %v4998_v50  ;;  %v6635_v32 = vld [vmem:[#allocation35_spill] sm:$0xff]  ;;  %v1100_v50 = vcombine.high %v4964_v19, %v4947_v25  ;;  %v1132_v56 = vcombine.high %v4944_v40, %v4928_v16  ;;  %v6643_v19 = vld [vmem:[#allocation73_spill] sm:$0xff]  ;;  %v6644_v16 = vld [vmem:[#allocation68_spill] sm:$0xff] }
 0x1e1   : > { %v1699_v48 = vcombine.low %v6635_v32, %v6634_v23  ;;  %v5187_v25 = vrot.slane %v1747_v20, %v4253_v57  ;;  %v2243_v40 = vcombine.low %v6644_v16, %v6643_v19  ;;  %6651 = vst [vmem:[#allocation17_spill] sm:$0xff] %v5199_v4  ;;  %v2106_v20 = vcombine.high %v5095_v6, %v5080_v43 }
 0x1e2   : > { %v2240_v16 = vcombine.high %v2195_v12, %v5090_v15  ;;  %v5205_v19 = vrot.slane %v1219_v2, %v4292_v29  ;;  %v1676_v43 = vcombine.high %v4982_v14, %v4969_v63  ;;  %v5226_v6 = vrot.slane %v2259_v55, %v4253_v57 }
 0x1e3   : > { %v5223_v15 = vrot.slane %v2243_v40, %v4253_v57  ;;  %v2803_v63 = vcombine.low %v4898_v61, %v4939_v52  ;;  %v2819_v14 = vcombine.low %v4986_v45, %v5092_v0  ;;  %v1644_v40 = vcombine.high %v5003_v34, %v4979_v28  ;;  %v5250_v55 = vpop.permute.xlu1 %826  ;;  %v6662_v45 = vld [vmem:[#allocation27_spill] sm:$0xff] }
 0x1e4   : > { %3259 = vrot.lane.b32.xlu0 %v1018_v13, %s4058_s29  ;;  %3197 = vrot.lane.b32.xlu1 %v1152_v60, %s4056_s27  ;;  %v1696_v13 = vcombine.high %v5063_v38, %v5045_v33  ;;  %v5178_v60 = vrot.slane %v1699_v48, %v4253_v57  ;;  %v6647_v33 = vld [vmem:[#allocation81_spill] sm:$0xff]  ;;  %v6649_v48 = vld [vmem:[#allocation82_spill] sm:$0xff]  ;;  %6652 = vst [vmem:[#allocation53_spill] sm:$0xff] %v5250_v55 }
 0x1e5   : > { %v6648_v38 = vld [vmem:[#allocation77_spill] sm:$0xff]  ;;  %v2291_v58 = vcombine.low %v6650_v46, %v6649_v48  ;;  %v5215_v46 = vrot.slane %v1100_v50, %v4292_v29  ;;  %v5218_v48 = vrot.slane %v1132_v56, %v4292_v29  ;;  %v2835_v50 = vcombine.low %v5037_v5, %v5127_v51  ;;  %v6660_v5 = vld [vmem:[#allocation18_spill] sm:$0xff] }
 0x1e6   : > { %v2275_v8 = vcombine.low %v6648_v38, %v6647_v33  ;;  %v1795_v38 = vcombine.low %v5184_v7, %v5187_v25  ;;  %v2650_v56 = vcombine.high %v5116_v36, %v5108_v22  ;;  %v2307_v28 = vcombine.low %v5223_v15, %v5226_v6  ;;  %v6673_v33 = vld [vmem:[#allocation65_spill] sm:$0xff] }
 0x1e7   : > { %v5234_v2 = vrot.slane %v2291_v58, %v4253_v57  ;;  %v1153_v58 = vcombine.low %v5215_v46, %v5218_v48  ;;  %v2220_v36 = vcombine.high %v5027_v3, %v5010_v35  ;;  %v2188_v35 = vcombine.high %v5048_v1, %v5021_v54  ;;  %v5290_v3 = vpop.permute.xlu0 %3067 }
 0x1e8   : > { %3263 = vrot.lane.b32.xlu0 %v1562_v44, %s4058_s29  ;;  %3201 = vrot.lane.b32.xlu1 %v1696_v13, %s4056_s27  ;;  %v5208_v44 = vrot.slane %v1251_v27, %v4292_v29  ;;  %v1763_v13 = vcombine.low %v5178_v60, %v5181_v49  ;;  %v5231_v12 = vrot.slane %v2275_v8, %v4253_v57 }
 0x1e9   : > { %v2787_v27 = vcombine.low %v4866_v47, %v4915_v39  ;;  %6653 = vst [vmem:[#allocation49_spill] sm:$0xff] %v5290_v3  ;;  %v6671_v47 = vld [vmem:[#allocation61_spill] sm:$0xff] }
 0x1ea   : > { %v1283_v8 = vcombine.low %v5205_v19, %v5208_v44  ;;  %v5259_v22 = vrot.slane %v1763_v13, %v4292_v29  ;;  %v2339_v34 = vcombine.low %v5231_v12, %v5234_v2  ;;  %v5277_v13 = vrot.slane %v2803_v63, %v4253_v57 }
 0x1eb   : > { %v5324_v3 = vpop.permute.xlu0 %3071 }
 0x1ec   : > { %3267 = vrot.lane.b32.xlu0 %v2106_v20, %s4058_s29  ;;  %3205 = vrot.lane.b32.xlu1 %v2240_v16, %s4056_s27  ;;  %v2784_v16 = vcombine.high %v5119_v42, %v5111_v24  ;;  %v5262_v24 = vrot.slane %v1795_v38, %v4292_v29  ;;  %v5271_v42 = vrot.slane %v1676_v43, %v4292_v29  ;;  %v5294_v43 = vpop.permute.xlu1 %837 }
 0x1ed   : > { %v5274_v20 = vrot.slane %v2787_v27, %v4253_v57  ;;  %v5280_v38 = vrot.slane %v2819_v14, %v4253_v57  ;;  %6654 = vst [vmem:[#allocation46_spill] sm:$0xff] %v5294_v43  ;;  %v5301_v14 = vrot.slane %v2307_v28, %v4292_v29  ;;  %v5304_v54 = vrot.slane %v2339_v34, %v4292_v29 }
 0x1ee   : > { %v1827_v27 = vcombine.low %v5259_v22, %v5262_v24  ;;  %v5320_v28 = vrot.slane %v2188_v35, %v4292_v29  ;;  %6655 = vst [vmem:[#allocation41_spill] sm:$0xff] %v5324_v3 }
 0x1ef   : > { %v2851_v1 = vcombine.low %v5274_v20, %v5277_v13  ;;  %v2371_v34 = vcombine.low %v5301_v14, %v5304_v54 }
 0x1f0   : > { %3271 = vrot.lane.b32.xlu0 %v2650_v56, %s4058_s29  ;;  %3209 = vrot.lane.b32.xlu1 %v2784_v16, %s4056_s27  ;;  %v5283_v56 = vrot.slane %v2835_v50, %v4253_v57  ;;  %v5286_v16 = vrot.slane %v1644_v40, %v4292_v29  ;;  %v2764_v40 = vcombine.high %v5071_v59, %v5055_v37  ;;  %s6334_s27 = scalar_lea.hbm %s6386_s1, %s3853_s18 }
 0x1f1   : > { %v5329_v59 = vrot.slane %v2851_v1, %v4292_v29  ;;  %v6659_v1 = vld [vmem:[#allocation25_spill] sm:$0xff] }
 0x1f2   : > { %v1697_v63 = vcombine.low %v5286_v16, %v5271_v42  ;;  %v2883_v50 = vcombine.low %v5280_v38, %v5283_v56  ;;  %v1307_v51 = vcombine.low %v6660_v5, %v6659_v1 }
 0x1f4   : > { %3291 = vrot.lane.b32.xlu0 %v1283_v8, %s4059_s30  ;;  %3229 = vrot.lane.b32.xlu1 %v1153_v58, %s4057_s28  ;;  %v5313_v8 = vrot.slane %v2220_v36, %v4292_v29  ;;  %v2732_v58 = vcombine.high %v5085_v41, %v5068_v26  ;;  %v5332_v26 = vrot.slane %v2883_v50, %v4292_v29  ;;  %v5337_v36 = vpop.permute.xlu1 %848  ;;  %v6661_v50 = vld [vmem:[#allocation31_spill] sm:$0xff] }
 0x1f5   : > { %v5335_v41 = vrot.slane %v2764_v40, %v4292_v29  ;;  %6656 = vst [vmem:[#allocation51_spill] sm:$0xff] %v5337_v36  ;;  %v1323_v0 = vcombine.low %v6662_v45, %v6661_v50  ;;  %v5350_v40 = vpop.permute.xlu0 %3075  ;;  %v1284_v45 = vcombine.high %v5205_v19, %v5208_v44  ;;  %v6669_v44 = vld [vmem:[#allocation58_spill] sm:$0xff] }
 0x1f6   : > { %v2241_v37 = vcombine.low %v5320_v28, %v5313_v8  ;;  %v5342_v35 = vrot.slane %v2732_v58, %v4292_v29  ;;  %6663 = vst [vmem:[#allocation48_spill] sm:$0xff] %v5350_v40  ;;  %v2915_v61 = vcombine.low %v5329_v59, %v5332_v26  ;;  %v6665_v58 = vld [vmem:[#allocation30_spill] sm:$0xff]  ;;  %v5368_v40 = vrot.slane %v1307_v51, %v4253_v57  ;;  %v6672_v51 = vld [vmem:[#allocation59_spill] sm:$0xff] }
 0x1f7   : > { %v5371_v5 = vrot.slane %v1323_v0, %v4253_v57  ;;  %v1867_v39 = vcombine.low %v6672_v51, %v6671_v47  ;;  %v6674_v0 = vld [vmem:[#allocation60_spill] sm:$0xff]  ;;  %v1828_v51 = vcombine.high %v5259_v22, %v5262_v24  ;;  %v6676_v22 = vld [vmem:[#allocation87_spill] sm:$0xff] }
 0x1f8   : > { %3295 = vrot.lane.b32.xlu0 %v1827_v27, %s4059_s30  ;;  %3233 = vrot.lane.b32.xlu1 %v1697_v63, %s4057_s28  ;;  %v6657_v27 = vld [vmem:[#allocation22_spill] sm:$0xff]  ;;  %v6658_v63 = vld [vmem:[#allocation16_spill] sm:$0xff]  ;;  %v1883_v53 = vcombine.low %v6674_v0, %v6673_v33  ;;  %v1698_v0 = vcombine.high %v5286_v16, %v5271_v42  ;;  %v6677_v24 = vld [vmem:[#allocation83_spill] sm:$0xff] }
 0x1f9   : > { %v1291_v3 = vcombine.low %v6658_v63, %v6657_v27  ;;  %v5360_v63 = vpop.permute.xlu1 %859  ;;  %v2379_v42 = vcombine.low %v6677_v24, %v6676_v22  ;;  %v6678_v16 = vld [vmem:[#allocation88_spill] sm:$0xff]  ;;  %v2372_v24 = vcombine.high %v5301_v14, %v5304_v54  ;;  %v6698_v22 = vld [vmem:[#allocation45_spill] sm:$0xff] }
 0x1fa   : > { %6666 = vst [vmem:[#allocation44_spill] sm:$0xff] %v5360_v63  ;;  %v6679_v33 = vld [vmem:[#allocation84_spill] sm:$0xff] }
 0x1fb   : > { %v5365_v50 = vrot.slane %v1291_v3, %v4253_v57  ;;  %v6670_v3 = vld [vmem:[#allocation54_spill] sm:$0xff]  ;;  %v2395_v47 = vcombine.low %v6679_v33, %v6678_v16  ;;  %v2242_v33 = vcombine.high %v5320_v28, %v5313_v8  ;;  %v5455_v8 = vrot.slane %v2379_v42, %v4253_v57 }
 0x1fc   : > { %3299 = vrot.lane.b32.xlu0 %v2371_v34, %s4059_s30  ;;  %3237 = vrot.lane.b32.xlu1 %v2241_v37, %s4057_s28  ;;  %v2785_v34 = vcombine.low %v5342_v35, %v5335_v41  ;;  %v6664_v37 = vld [vmem:[#allocation34_spill] sm:$0xff]  ;;  %v1851_v27 = vcombine.low %v6670_v3, %v6669_v44 }
 0x1fd   : > { %v1339_v52 = vcombine.low %v6665_v58, %v6664_v37  ;;  %v6667_v58 = vld [vmem:[#allocation57_spill] sm:$0xff]  ;;  %v6668_v37 = vld [vmem:[#allocation52_spill] sm:$0xff]  ;;  %v5458_v28 = vrot.slane %v2395_v47, %v4253_v57  ;;  %v2939_v47 = vcombine.low %v5199_v4, %v5294_v43  ;;  %v6697_v16 = vld [vmem:[#allocation50_spill] sm:$0xff] }
 0x1fe   : > { %v1835_v19 = vcombine.low %v6668_v37, %v6667_v58  ;;  %v1748_v37 = vcombine.high %v6698_v22, %v6697_v16 }
 0x200   : > { %3303 = vrot.lane.b32.xlu0 %v2915_v61, %s4059_s30  ;;  %3241 = vrot.lane.b32.xlu1 %v2785_v34, %s4057_s28  ;;  %v1154_v61 = vcombine.high %v5215_v46, %v5218_v48  ;;  %v5378_v34 = vrot.slane %v1339_v52, %v4253_v57  ;;  %v1220_v52 = vcombine.high %v5147_v17, %v5138_v10  ;;  %s3725_s28 = scalar_lea.sflag [#allocation4], %s4164_s16 }
 0x201   : > { %v1252_v46 = vcombine.high %v5141_v30, %v5144_v11  ;;  %v1355_v48 = vcombine.low %v5365_v50, %v5368_v40  ;;  %v5408_v17 = vrot.slane %v1851_v27, %v4253_v57  ;;  %v5411_v10 = vrot.slane %v1867_v39, %v4253_v57  ;;  %v5413_v30 = vpop.permute.xlu1 %870  ;;  %v6680_v27 = vld [vmem:[#allocation89_spill] sm:$0xff] }
 0x202   : > { %v5373_v1 = vpop.permute.xlu0 %3079  ;;  %6675 = vst [vmem:[#allocation39_spill] sm:$0xff] %v5413_v30  ;;  %v5416_v11 = vrot.slane %v1883_v53, %v4253_v57  ;;  %v2427_v39 = vcombine.low %v4734_v31, %v4828_v9  ;;  %v5429_v44 = vrot.slane %v1220_v52, %v4292_v29  ;;  %v1764_v31 = vcombine.high %v5178_v60, %v5181_v49 }
 0x203   : > { %v1796_v52 = vcombine.high %v5184_v7, %v5187_v25  ;;  %v2923_v60 = vcombine.low %v5161_v62, %v5250_v55  ;;  %v6692_v62 = vld [vmem:[#allocation9_spill] sm:$0xff]  ;;  %v1388_v22 = vcombine.high %v5371_v5, %v5378_v34 }
 0x204   : > { %3323 = vrot.lane.b32.xlu0 %v1284_v45, %s4060_s2  ;;  %3261 = vrot.lane.b32.xlu1 %v1154_v61, %s4058_s29  ;;  %v1387_v45 = vcombine.low %v5371_v5, %v5378_v34  ;;  %v5405_v61 = vrot.slane %v1835_v19, %v4253_v57  ;;  %v2411_v19 = vcombine.low %v6680_v27, %v4777_v18  ;;  %v6696_v27 = vld [vmem:[#allocation40_spill] sm:$0xff] }
 0x205   : > { %v1931_v54 = vcombine.low %v5411_v10, %v5416_v11  ;;  %v5466_v49 = vrot.slane %v2427_v39, %v4253_v57  ;;  %v5470_v25 = vpop.permute.xlu1 %881 }
 0x206   : > { %v5396_v3 = vpop.permute.xlu0 %3099  ;;  %v1899_v9 = vcombine.low %v5405_v61, %v5408_v17  ;;  %v5450_v14 = vrot.slane %v1387_v45, %v4292_v29  ;;  %v5463_v7 = vrot.slane %v2411_v19, %v4253_v57  ;;  %6681 = vst [vmem:[#allocation76_spill] sm:$0xff] %v5470_v25  ;;  %v5494_v19 = vrot.slane %v1796_v52, %v4292_v29 }
 0x207   : > { %v5511_v52 = vrot.slane %v2923_v60, %v4253_v57 }
 0x208   : > { %3327 = vrot.lane.b32.xlu0 %v1828_v51, %s4060_s2  ;;  %3265 = vrot.lane.b32.xlu1 %v1698_v0, %s4058_s29  ;;  %v5438_v51 = vrot.slane %v1252_v46, %v4292_v29  ;;  %v5441_v0 = vrot.slane %v1355_v48, %v4292_v29  ;;  %v2916_v46 = vcombine.high %v5329_v59, %v5332_v26 }
 0x209   : > { %v2971_v48 = vcombine.low %v5360_v63, %v5470_v25  ;;  %v5489_v26 = vrot.slane %v1764_v31, %v4292_v29  ;;  %v5497_v39 = vrot.slane %v1899_v9, %v4292_v29  ;;  %v2340_v31 = vcombine.high %v5231_v12, %v5234_v2  ;;  %v5524_v12 = vpop.permute.xlu1 %3069 }
 0x20a   : > { %v5431_v53 = vpop.permute.xlu0 %3103  ;;  %v1285_v42 = vcombine.low %v5429_v44, %v5438_v51  ;;  %v1419_v59 = vcombine.low %v5441_v0, %v5450_v14  ;;  %v5514_v9 = vrot.slane %v2939_v47, %v4253_v57  ;;  %6682 = vst [vmem:[#allocation72_spill] sm:$0xff] %v5524_v12 }
 0x20b   : > { %v1829_v2 = vcombine.low %v5489_v26, %v5494_v19  ;;  %v1830_v34 = vcombine.high %v5489_v26, %v5494_v19 }
 0x20c   : > { %3331 = vrot.lane.b32.xlu0 %v2372_v24, %s4060_s2  ;;  %3269 = vrot.lane.b32.xlu1 %v2242_v33, %s4058_s29  ;;  %v2955_v33 = vcombine.low %v5337_v36, %v5413_v30  ;;  %v2786_v24 = vcombine.high %v5342_v35, %v5335_v41  ;;  %v5500_v41 = vrot.slane %v1931_v54, %v4292_v29  ;;  %v6685_v36 = vld [vmem:[#allocation15_spill] sm:$0xff] }
 0x20d   : > { %v2308_v35 = vcombine.high %v5223_v15, %v5226_v6  ;;  %v5520_v15 = vrot.slane %v2971_v48, %v4253_v57  ;;  %v2987_v63 = vcombine.low %v5511_v52, %v5514_v9  ;;  %v5564_v30 = vpop.permute.xlu1 %3073 }
 0x20e   : > { %v5480_v45 = vpop.permute.xlu0 %3107  ;;  %v5517_v54 = vrot.slane %v2955_v33, %v4253_v57  ;;  %v1963_v60 = vcombine.low %v5497_v39, %v5500_v41  ;;  %v5536_v33 = vrot.slane %v2340_v31, %v4292_v29  ;;  %6687 = vst [vmem:[#allocation69_spill] sm:$0xff] %v5564_v30 }
 0x20f   : > { %v5533_v47 = vrot.slane %v2308_v35, %v4292_v29 }
 0x210   : > { %3335 = vrot.lane.b32.xlu0 %v2916_v46, %s4060_s2  ;;  %3273 = vrot.lane.b32.xlu1 %v2786_v24, %s4058_s29  ;;  %v2443_v46 = vcombine.low %v5455_v8, %v5458_v28  ;;  %v2475_v24 = vcombine.low %v5463_v7, %v5466_v49  ;;  %v3019_v35 = vcombine.low %v5517_v54, %v5520_v15  ;;  %s3965_s29 = scalar_lea.vmem %s6329_s17, 1024 }
 0x211   : > { %p3966_p8 = scmp.ne.s32.totalorder %s6329_s17, %s3965_s29 }
 0x212   : > { %v5522_v6 = vpop.permute.xlu0 %3111  ;;  %v5539_v48 = vrot.slane %v2443_v46, %v4292_v29  ;;  %v5542_v12 = vrot.slane %v2475_v24, %v4292_v29  ;;  %v6683_v46 = vld [vmem:[#allocation14_spill] sm:$0xff]  ;;  %v6684_v24 = vld [vmem:[#allocation12_spill] sm:$0xff] }
 0x213   : > { %v1188_v25 = vcombine.high %v6684_v24, %v6683_v46  ;;  %v5575_v46 = vrot.slane %v2987_v63, %v4292_v29  ;;  %v6688_v24 = vld [vmem:[#allocation11_spill] sm:$0xff]  ;;  %p3967_p12 = pnand %p3966_p8, %p4131_p9 }
 0x214   : > { %3355 = vrot.lane.b32.xlu0 %v1285_v42, %s4061_s3  ;;  %3293 = vrot.lane.b32.xlu1 %v1419_v59, %s4059_s30  ;;  %v2852_v42 = vcombine.high %v5274_v20, %v5277_v13  ;;  %v2884_v59 = vcombine.high %v5280_v38, %v5283_v56  ;;  %v6686_v20 = vld [vmem:[#allocation13_spill] sm:$0xff]  ;;  %v2373_v38 = vcombine.low %v5533_v47, %v5536_v33 }
 0x215   : > { %v1204_v13 = vcombine.high %v6686_v20, %v6685_v36  ;;  %v2507_v56 = vcombine.low %v5539_v48, %v5542_v12  ;;  %v5578_v36 = vrot.slane %v3019_v35, %v4292_v29  ;;  %v6689_v20 = vld [vmem:[#allocation8_spill] sm:$0xff]  ;;  %v5585_v43 = vrot.slane %v1188_v25, %v4253_v57  ;;  %p3968_p0 = pneg %p3967_p12 }
 0x216   : > { %v5552_v31 = vpop.permute.xlu0 %3131  ;;  %v1172_v30 = vcombine.high %v6689_v20, %v6688_v24  ;;  %v1700_v25 = vcombine.high %v6635_v32, %v6634_v23  ;;  %v6693_v24 = vld [vmem:[#allocation38_spill] sm:$0xff]  ;;  %v6694_v20 = vld [vmem:[#allocation36_spill] sm:$0xff] }
 0x218   : > { %3359 = vrot.lane.b32.xlu0 %v1829_v2, %s4061_s3  ;;  %3297 = vrot.lane.b32.xlu1 %v1963_v60, %s4059_s30  ;;  %v5569_v2 = vrot.slane %v2852_v42, %v4292_v29  ;;  %v5572_v60 = vrot.slane %v2884_v59, %v4292_v29  ;;  %v5588_v42 = vrot.slane %v1204_v13, %v4253_v57  ;;  %v5590_v59 = vpop.permute.xlu1 %3077 }
 0x219   : > { %6690 = vst [vmem:[#allocation66_spill] sm:$0xff] %v5590_v59  ;;  %v1716_v13 = vcombine.high %v6694_v20, %v6693_v24  ;;  %v6695_v59 = vld [vmem:[#allocation47_spill] sm:$0xff]  ;;  %v5611_v58 = vrot.slane %v1172_v30, %v4253_v57  ;;  %v1356_v30 = vcombine.high %v5365_v50, %v5368_v40  ;;  %v5631_v16 = vrot.slane %v1700_v25, %v4253_v57  ;;  %v6703_v24 = vld [vmem:[#allocation81_spill] sm:$0xff] }
 0x21a   : > { %v5566_v4 = vpop.permute.xlu0 %3135  ;;  %v2917_v35 = vcombine.low %v5569_v2, %v5572_v60  ;;  %v1732_v18 = vcombine.high %v6696_v27, %v6695_v59  ;;  %v6704_v20 = vld [vmem:[#allocation77_spill] sm:$0xff] }
 0x21b   : > { %v5634_v59 = vrot.slane %v1716_v13, %v4253_v57  ;;  %v2276_v13 = vcombine.high %v6704_v20, %v6703_v24  ;;  %v5670_v19 = vrot.slane %v1356_v30, %v4292_v29  ;;  %v2374_v30 = vcombine.high %v5533_v47, %v5536_v33  ;;  %v6708_v33 = vld [vmem:[#allocation97_spill] sm:$0xff]  ;;  %v6712_v20 = vld [vmem:[#allocation24_spill] sm:$0xff] }
 0x21c   : > { %3363 = vrot.lane.b32.xlu0 %v2373_v38, %s4061_s3  ;;  %3301 = vrot.lane.b32.xlu1 %v2507_v56, %s4059_s30  ;;  %v3051_v38 = vcombine.low %v5575_v46, %v5578_v36  ;;  %v6691_v56 = vld [vmem:[#allocation10_spill] sm:$0xff] }
 0x21d   : > { %v1156_v55 = vcombine.high %v6692_v62, %v6691_v56  ;;  %v1267_v62 = vcombine.low %v5585_v43, %v5588_v42  ;;  %v6702_v56 = vld [vmem:[#allocation70_spill] sm:$0xff]  ;;  %v1779_v26 = vcombine.low %v5631_v16, %v5634_v59 }
 0x21e   : > { %v5592_v63 = vpop.permute.xlu0 %3139  ;;  %v2260_v25 = vcombine.high %v6702_v56, %v6645_v21  ;;  %v6711_v56 = vld [vmem:[#allocation96_spill] sm:$0xff] }
 0x21f   : > { %v5624_v27 = vrot.slane %v1156_v55, %v4253_v57  ;;  %v5639_v55 = vrot.slane %v1732_v18, %v4253_v57  ;;  %v6700_v18 = vld [vmem:[#allocation73_spill] sm:$0xff]  ;;  %v5711_v47 = vrot.slane %v1779_v26, %v4292_v29 }
 0x220   : > { %3367 = vrot.lane.b32.xlu0 %v2917_v35, %s4061_s3  ;;  %3305 = vrot.lane.b32.xlu1 %v3051_v38, %s4059_s30  ;;  %v1286_v35 = vcombine.high %v5429_v44, %v5438_v51  ;;  %v1420_v38 = vcombine.high %v5441_v0, %v5450_v14  ;;  %v5642_v44 = vrot.slane %v1748_v37, %v4253_v57  ;;  %v6701_v14 = vld [vmem:[#allocation68_spill] sm:$0xff]  ;;  %s3969_s30 = sshll.u32 %s4068_s9, 4  ;;  %s3970_s30 = int_to_ptr.vmem [resolvable:$false] %s3969_s30 }
 0x221   : > { %v1235_v5 = vcombine.low %v5624_v27, %v5611_v58  ;;  %v1964_v51 = vcombine.high %v5497_v39, %v5500_v41  ;;  %v5655_v0 = vrot.slane %v1267_v62, %v4292_v29  ;;  %v2244_v37 = vcombine.high %v6701_v14, %v6700_v18  ;;  %p3972_p1 = scmp.lt.s32.totalorder %s6329_s17, %s3970_s30 }
 0x222   : > { %v5615_v23 = vpop.permute.xlu1 %3081  ;;  %v5617_v32 = vpop.permute.xlu0 %3143  ;;  %v5673_v39 = vrot.slane %v1388_v22, %v4292_v29  ;;  %v1811_v21 = vcombine.low %v5639_v55, %v5642_v44  ;;  %v1900_v41 = vcombine.high %v5405_v61, %v5408_v17  ;;  %v1932_v62 = vcombine.high %v5411_v10, %v5416_v11 }
 0x223   : > { %v2508_v22 = vcombine.high %v5539_v48, %v5542_v12  ;;  %v5693_v14 = vrot.slane %v2244_v37, %v4253_v57  ;;  %v5696_v61 = vrot.slane %v2260_v25, %v4253_v57  ;;  %v5699_v17 = vrot.slane %v2276_v13, %v4253_v57  ;;  %v6709_v48 = vld [vmem:[#allocation95_spill] sm:$0xff]  ;;  %v6710_v37 = vld [vmem:[#allocation28_spill] sm:$0xff]  ;;  %v6713_v13 = vld [vmem:[#allocation29_spill] sm:$0xff] }
 0x224   : > { %3387 = vrot.lane.b32.xlu0 %v1286_v35, %s4062_s4  ;;  %3325 = vrot.lane.b32.xlu1 %v1420_v38, %s4060_s2  ;;  %v6705_v35 = vld [vmem:[#allocation82_spill] sm:$0xff]  ;;  %v6706_v38 = vld [vmem:[#allocation80_spill] sm:$0xff]  ;;  %v1421_v12 = vcombine.low %v5670_v19, %v5673_v39  ;;  %v5718_v25 = vrot.slane %v1811_v21, %v4292_v29  ;;  %v5721_v24 = vrot.slane %v1900_v41, %v4292_v29 }
 0x225   : > { %v3052_v21 = vcombine.high %v5575_v46, %v5578_v36  ;;  %v2323_v41 = vcombine.low %v5693_v14, %v5696_v61 }
 0x226   : > { %v5646_v50 = vpop.permute.xlu1 %3101  ;;  %v5648_v40 = vpop.permute.xlu0 %3163 }
 0x227   : > { %6699 = vst [vmem:[#allocation74_spill] sm:$0xff] %v5646_v50  ;;  %v2292_v50 = vcombine.high %v6706_v38, %v6705_v35  ;;  %v2820_v35 = vcombine.high %v6713_v13, %v6712_v20  ;;  %v6714_v38 = vld [vmem:[#allocation19_spill] sm:$0xff]  ;;  %v2476_v20 = vcombine.high %v5463_v7, %v5466_v49 }
 0x228   : > { %3391 = vrot.lane.b32.xlu0 %v1830_v34, %s4062_s4  ;;  %3329 = vrot.lane.b32.xlu1 %v1964_v51, %s4060_s2  ;;  %v5690_v51 = vrot.slane %v1235_v5, %v4292_v29  ;;  %v2788_v5 = vcombine.high %v6709_v48, %v6708_v33  ;;  %v2918_v33 = vcombine.high %v5569_v2, %v5572_v60  ;;  %v6716_v2 = vld [vmem:[#allocation85_spill] sm:$0xff]  ;;  %v6717_v60 = vld [vmem:[#allocation86_spill] sm:$0xff] }
 0x229   : > { %v5702_v10 = vrot.slane %v2292_v50, %v4253_v57  ;;  %v2804_v50 = vcombine.high %v6711_v56, %v6710_v37  ;;  %v5740_v37 = vrot.slane %v1932_v62, %v4292_v29  ;;  %v2444_v56 = vcombine.high %v5455_v8, %v5458_v28 }
 0x22a   : > { %v5681_v18 = vpop.permute.xlu1 %3105  ;;  %v5683_v34 = vpop.permute.xlu0 %3167  ;;  %v1287_v11 = vcombine.low %v5690_v51, %v5655_v0  ;;  %v6718_v46 = vcombine.low %v6716_v2, %v6717_v60  ;;  %v5754_v62 = vrot.slane %v2788_v5, %v4253_v57  ;;  %v5762_v28 = vrot.slane %v2820_v35, %v4253_v57 }
 0x22b   : > { %6707 = vst [vmem:[#allocation71_spill] sm:$0xff] %v5681_v18  ;;  %v2355_v48 = vcombine.low %v5699_v17, %v5702_v10  ;;  %v5757_v13 = vrot.slane %v2804_v50, %v4253_v57  ;;  %v6720_v50 = vld [vmem:[#allocation20_spill] sm:$0xff]  ;;  %v1831_v35 = vcombine.low %v5711_v47, %v5718_v25  ;;  %v5788_v2 = vrot.slane %v2323_v41, %v4292_v29 }
 0x22c   : > { %3395 = vrot.lane.b32.xlu0 %v2374_v30, %s4062_s4  ;;  %3333 = vrot.lane.b32.xlu1 %v2508_v22, %s4060_s2  ;;  %v6715_v30 = vld [vmem:[#allocation26_spill] sm:$0xff]  ;;  %v3546_v36 = vsel %vm3539_vm0, %v6718_v46, %v5373_v1  ;;  %v2988_v41 = vcombine.high %v5511_v52, %v5514_v9  ;;  %v6728_v52 = vld [vmem:[#allocation16_spill] sm:$0xff] }
 0x22d   : > { %v2836_v22 = vcombine.high %v6715_v30, %v6714_v38  ;;  %v3555_v8 = vsel %vm3548_vm1, %v3546_v36, %v5522_v6  ;;  %v6719_v38 = vld [vmem:[#allocation49_spill] sm:$0xff]  ;;  %v5791_v60 = vrot.slane %v2355_v48, %v4292_v29  ;;  %v2867_v46 = vcombine.low %v5754_v62, %v5757_v13 }
 0x22e   : > { %v5727_v26 = vpop.permute.xlu1 %3109  ;;  %v5729_v18 = vpop.permute.xlu0 %3171  ;;  %v3564_v7 = vsel %vm3557_vm2, %v3555_v8, %v5617_v32  ;;  %v6721_v30 = vld [vmem:[#allocation21_spill] sm:$0xff]  ;;  %v3020_v48 = vcombine.high %v5517_v54, %v5520_v15  ;;  %v6730_v54 = vld [vmem:[#allocation18_spill] sm:$0xff] }
 0x22f   : > { %v5765_v1 = vrot.slane %v2836_v22, %v4253_v57  ;;  %v1965_v22 = vcombine.low %v5721_v24, %v5740_v37 }
 0x230   : > { %3399 = vrot.lane.b32.xlu0 %v2918_v33, %s4062_s4  ;;  %3337 = vrot.lane.b32.xlu1 %v3052_v21, %s4060_s2  ;;  %v6722_v33 = vcombine.low %v6720_v50, %v6721_v30  ;;  %s3971_s2 = scalar_lea.vmem %s3970_s30, 2048 }
 0x231   : > { %p3973_p3 = scmp.lt.s32.totalorder %s3971_s2, %s3965_s29 }
 0x232   : > { %v5769_v49 = vpop.permute.xlu1 %3113  ;;  %v3176_v5 = vpop.permute.xlu0 %3175  ;;  %v3540_v6 = vsel %vm3539_vm0, %v6722_v33, %v6719_v38  ;;  %v6725_v38 = vld [vmem:[#allocation43_spill] sm:$0xff]  ;;  %v6727_v33 = vld [vmem:[#allocation22_spill] sm:$0xff] }
 0x233   : > { %v5777_v21 = vsel %vm3566_vm3, %v3564_v7, %v3176_v5  ;;  %v3549_v32 = vsel %vm3548_vm1, %v3540_v6, %v5396_v3  ;;  %v5798_v3 = vrot.slane %v2444_v56, %v4292_v29  ;;  %v6723_v56 = vld [vmem:[#allocation41_spill] sm:$0xff]  ;;  %v6724_v5 = vld [vmem:[#allocation42_spill] sm:$0xff]  ;;  %v1292_v9 = vcombine.high %v6728_v52, %v6727_v33  ;;  %v6735_v52 = vld [vmem:[#allocation31_spill] sm:$0xff]  ;;  %p3974_p5 = por %p3973_p3, %p3972_p1 }
 0x234   : > { %3419 = vrot.lane.b32.xlu0 %v1287_v11, %s4063_s5  ;;  %3357 = vrot.lane.b32.xlu1 %v1421_v12, %s4061_s3  ;;  %v3558_v36 = vsel %vm3557_vm2, %v3549_v32, %v5552_v31  ;;  %v5801_v11 = vrot.slane %v2476_v20, %v4292_v29  ;;  %v2899_v12 = vcombine.low %v5762_v28, %v5765_v1  ;;  %v6729_v6 = vld [vmem:[#allocation25_spill] sm:$0xff] }
 0x235   : > { %v3567_v8 = vsel %vm3566_vm3, %v3558_v36, %v5648_v40  ;;  %v6726_v20 = vcombine.low %v6724_v5, %v6725_v38  ;;  %v1308_v15 = vcombine.high %v6730_v54, %v6729_v6  ;;  %v2375_v36 = vcombine.low %v5788_v2, %v5791_v60  ;;  %v6731_v38 = vld [vmem:[#allocation48_spill] sm:$0xff]  ;;  %v6736_v6 = vld [vmem:[#allocation27_spill] sm:$0xff]  ;;  %p3975_p6 = pnand %p3974_p5, %p3968_p0 }
 0x236   : > { %v5811_v7 = vpop.permute.xlu1 %3133  ;;  %v3196_v31 = vpop.permute.xlu0 %3195  ;;  %v5849_v5 = vrot.slane %v3020_v48, %v4292_v29  ;;  %v1324_v54 = vcombine.high %v6736_v6, %v6735_v52  ;;  %v5868_v48 = vrot.slane %v1292_v9, %v4253_v57  ;;  %v6740_v52 = vld [vmem:[#allocation52_spill] sm:$0xff] }
 0x237   : > { %v3542_v50 = vsel %vm3539_vm0, %v6726_v20, %v6723_v56  ;;  %v5819_v30 = vsel %vm3575_vm4, %v3567_v8, %v3196_v31  ;;  %v2509_v8 = vcombine.low %v5798_v3, %v5801_v11  ;;  %v5836_v31 = vrot.slane %v2867_v46, %v4292_v29  ;;  %v6732_v20 = vld [vmem:[#allocation63_spill] sm:$0xff] }
 0x238   : > { %v3551_v40 = vsel %vm3548_vm1, %v3542_v50, %v5431_v53  ;;  %3423 = vrot.lane.b32.xlu0 %v1831_v35, %s4063_s5  ;;  %3361 = vrot.lane.b32.xlu1 %v1965_v22, %s4061_s3  ;;  %v5843_v22 = vrot.slane %v2899_v12, %v4292_v29  ;;  %v6733_v50 = vld [vmem:[#allocation64_spill] sm:$0xff]  ;;  %v6737_v12 = vld [vmem:[#allocation34_spill] sm:$0xff] }
 0x239   : > { %v3560_v32 = vsel %vm3557_vm2, %v3551_v40, %v5566_v4  ;;  %v5846_v4 = vrot.slane %v2988_v41, %v4292_v29  ;;  %v6734_v46 = vcombine.low %v6732_v20, %v6733_v50  ;;  %v6738_v40 = vld [vmem:[#allocation30_spill] sm:$0xff] }
 0x23a   : > { %v3569_v56 = vsel %vm3566_vm3, %v3560_v32, %v5683_v34  ;;  %v5840_v53 = vpop.permute.xlu1 %3137  ;;  %v3200_v35 = vpop.permute.xlu0 %3199  ;;  %v1340_v32 = vcombine.high %v6738_v40, %v6737_v12  ;;  %v1422_v40 = vcombine.high %v5670_v19, %v5673_v39 }
 0x23b   : > { %v3544_v33 = vsel %vm3539_vm0, %v6734_v46, %v6731_v38  ;;  %v5857_v34 = vsel %vm3575_vm4, %v3569_v56, %v3200_v35  ;;  %v5871_v38 = vrot.slane %v1308_v15, %v4253_v57  ;;  %v5887_v15 = vrot.slane %v1324_v54, %v4253_v57 }
 0x23c   : > { %v3553_v41 = vsel %vm3548_vm1, %v3544_v33, %v5480_v45  ;;  %3427 = vrot.lane.b32.xlu0 %v2375_v36, %s4063_s5  ;;  %3365 = vrot.lane.b32.xlu1 %v2509_v8, %s4061_s3  ;;  %v2919_v45 = vcombine.low %v5836_v31, %v5843_v22  ;;  %v3053_v36 = vcombine.low %v5846_v4, %v5849_v5  ;;  %v6739_v33 = vld [vmem:[#allocation57_spill] sm:$0xff] }
 0x23d   : > { %v3562_v56 = vsel %vm3557_vm2, %v3553_v41, %v5592_v63  ;;  %v5890_v63 = vrot.slane %v1340_v32, %v4253_v57  ;;  %v1268_v8 = vcombine.high %v5585_v43, %v5588_v42  ;;  %v1371_v46 = vcombine.low %v5868_v48, %v5871_v38  ;;  %v6741_v41 = vld [vmem:[#allocation58_spill] sm:$0xff]  ;;  %v6744_v43 = vld [vmem:[#allocation59_spill] sm:$0xff] }
 0x23e   : > { %v3571_v35 = vsel %vm3566_vm3, %v3562_v56, %v5729_v18  ;;  %v5877_v20 = vpop.permute.xlu1 %3141  ;;  %v3204_v50 = vpop.permute.xlu0 %3203  ;;  %v1236_v18 = vcombine.high %v5624_v27, %v5611_v58  ;;  %v1836_v6 = vcombine.high %v6740_v52, %v6739_v33  ;;  %v1288_v32 = vcombine.high %v5690_v51, %v5655_v0  ;;  %v6742_v58 = vld [vmem:[#allocation54_spill] sm:$0xff]  ;;  %v6743_v56 = vld [vmem:[#allocation61_spill] sm:$0xff] }
 0x23f   : > { %v5884_v9 = vsel %vm3575_vm4, %v3571_v35, %v3204_v50  ;;  %v1852_v27 = vcombine.high %v6742_v58, %v6741_v41  ;;  %v1868_v42 = vcombine.high %v6744_v43, %v6743_v56  ;;  %v6745_v35 = vld [vmem:[#allocation65_spill] sm:$0xff]  ;;  %v6746_v50 = vld [vmem:[#allocation60_spill] sm:$0xff]  ;;  %v1403_v33 = vcombine.low %v5887_v15, %v5890_v63  ;;  %v6754_v56 = vld [vmem:[#allocation94_spill] sm:$0xff] }
 0x240   : > { %3431 = vrot.lane.b32.xlu0 %v2919_v45, %s4063_s5  ;;  %3369 = vrot.lane.b32.xlu1 %v3053_v36, %s4061_s3  ;;  %v1884_v45 = vcombine.high %v6746_v50, %v6745_v35  ;;  %v1780_v0 = vcombine.high %v5631_v16, %v5634_v59  ;;  %v5925_v19 = vrot.slane %v1371_v46, %v4292_v29  ;;  %v6748_v46 = vld [vmem:[#allocation87_spill] sm:$0xff]  ;;  %v6753_v58 = vld [vmem:[#allocation89_spill] sm:$0xff]  ;;  %v6755_v43 = vld [vmem:[#allocation90_spill] sm:$0xff] }
 0x241   : > { %v5928_v39 = vrot.slane %v1236_v18, %v4292_v29  ;;  %v5931_v51 = vrot.slane %v1268_v8, %v4292_v29  ;;  %v5936_v52 = vrot.slane %v1836_v6, %v4253_v57  ;;  %v1966_v16 = vcombine.high %v5721_v24, %v5740_v37  ;;  %v6749_v6 = vld [vmem:[#allocation83_spill] sm:$0xff]  ;;  %v6750_v24 = vld [vmem:[#allocation88_spill] sm:$0xff] }
 0x242   : > { %v5902_v54 = vpop.permute.xlu1 %3145  ;;  %v3208_v12 = vpop.permute.xlu0 %3207  ;;  %v1832_v59 = vcombine.high %v5711_v47, %v5718_v25  ;;  %v5945_v18 = vrot.slane %v1852_v27, %v4253_v57  ;;  %v5948_v8 = vrot.slane %v1868_v42, %v4253_v57  ;;  %v6751_v37 = vld [vmem:[#allocation84_spill] sm:$0xff]  ;;  %v5964_v47 = vrot.slane %v1403_v33, %v4292_v29  ;;  %v6752_v25 = vld [vmem:[#allocation91_spill] sm:$0xff] }
 0x243   : > { %v5916_v36 = vsel %vm3575_vm4, %v5777_v21, %v3208_v12  ;;  %v1812_v21 = vcombine.high %v5639_v55, %v5642_v44  ;;  %v5951_v55 = vrot.slane %v1884_v45, %v4253_v57  ;;  %v2396_v41 = vcombine.high %v6751_v37, %v6750_v24  ;;  %v6758_v37 = vld [vmem:[#allocation46_spill] sm:$0xff] }
 0x244   : > { %3389 = vrot.lane.b32.xlu1 %v1422_v40, %s4062_s4  ;;  %3451 = vrot.lane.b32.xlu0 %v1288_v32, %s4064_s12  ;;  %6747 = vst [vmem:[#allocation67_spill] sm:$0xff] %v5948_v8  ;;  %v2380_v32 = vcombine.high %v6749_v6, %v6748_v46  ;;  %v2412_v27 = vcombine.high %v6753_v58, %v6752_v25  ;;  %v6757_v6 = vld [vmem:[#allocation23_spill] sm:$0xff] }
 0x245   : > { %v2510_v50 = vcombine.high %v5798_v3, %v5801_v11  ;;  %v2376_v45 = vcombine.high %v5788_v2, %v5791_v60  ;;  %v5979_v33 = vrot.slane %v1780_v0, %v4292_v29  ;;  %v5990_v3 = vrot.slane %v1812_v21, %v4292_v29  ;;  %v6756_v21 = vld [vmem:[#allocation53_spill] sm:$0xff]  ;;  %v6760_v58 = vld [vmem:[#allocation39_spill] sm:$0xff] }
 0x246   : > { %v5938_v12 = vpop.permute.xlu1 %3165  ;;  %v3228_v40 = vpop.permute.xlu0 %3227  ;;  %v5993_v2 = vrot.slane %v2380_v32, %v4253_v57  ;;  %v5996_v60 = vrot.slane %v2396_v41, %v4253_v57  ;;  %v1423_v11 = vcombine.low %v5925_v19, %v5964_v47  ;;  %v6003_v0 = vrot.slane %v2412_v27, %v4253_v57  ;;  %v6759_v41 = vld [vmem:[#allocation17_spill] sm:$0xff] }
 0x247   : > { %v5955_v44 = vsel %vm3584_vm5, %v5819_v30, %v3228_v40  ;;  %v2428_v30 = vcombine.high %v6755_v43, %v6754_v56  ;;  %v1289_v40 = vcombine.low %v5928_v39, %v5931_v51  ;;  %v2924_v32 = vcombine.high %v6757_v6, %v6756_v21  ;;  %v6761_v56 = vld [vmem:[#allocation51_spill] sm:$0xff] }
 0x248   : > { %3393 = vrot.lane.b32.xlu1 %v1966_v16, %s4062_s4  ;;  %3455 = vrot.lane.b32.xlu0 %v1832_v59, %s4064_s12  ;;  %v1915_v16 = vcombine.low %v5936_v52, %v5945_v18  ;;  %v1947_v59 = vcombine.low %v5948_v8, %v5951_v55  ;;  %v2920_v24 = vcombine.high %v5836_v31, %v5843_v22 }
 0x249   : > { %v2940_v25 = vcombine.high %v6759_v41, %v6758_v37  ;;  %v2956_v43 = vcombine.high %v6761_v56, %v6760_v58  ;;  %v1833_v6 = vcombine.low %v5979_v33, %v5990_v3  ;;  %v2324_v37 = vcombine.high %v5693_v14, %v5696_v61 }
 0x24a   : > { %v5970_v42 = vpop.permute.xlu1 %3169  ;;  %v3232_v35 = vpop.permute.xlu0 %3231  ;;  %v6027_v31 = vrot.slane %v1915_v16, %v4292_v29  ;;  %v6030_v22 = vrot.slane %v1947_v59, %v4292_v29  ;;  %v2356_v41 = vcombine.high %v5699_v17, %v5702_v10  ;;  %v2459_v16 = vcombine.low %v5993_v2, %v5996_v60 }
 0x24b   : > { %v5987_v46 = vsel %vm3584_vm5, %v5857_v34, %v3232_v35  ;;  %v6006_v34 = vrot.slane %v2428_v30, %v4253_v57  ;;  %v6762_v35 = vld [vmem:[#allocation76_spill] sm:$0xff]  ;;  %v3054_v30 = vcombine.high %v5846_v4, %v5849_v5  ;;  %v6765_v5 = vld [vmem:[#allocation93_spill] sm:$0xff]  ;;  %v6050_v14 = vrot.slane %v2924_v32, %v4253_v57 }
 0x24c   : > { %3397 = vrot.lane.b32.xlu1 %v2510_v50, %s4062_s4  ;;  %3459 = vrot.lane.b32.xlu0 %v2376_v45, %s4064_s12  ;;  %v6763_v50 = vld [vmem:[#allocation44_spill] sm:$0xff]  ;;  %v6055_v17 = vrot.slane %v2940_v25, %v4253_v57 }
 0x24d   : > { %v2972_v45 = vcombine.high %v6763_v50, %v6762_v35  ;;  %v6764_v4 = vld [vmem:[#allocation92_spill] sm:$0xff]  ;;  %v2491_v59 = vcombine.low %v6003_v0, %v6006_v34  ;;  %v6769_v50 = vld [vmem:[#allocation33_spill] sm:$0xff] }
 0x24e   : > { %v6018_v27 = vpop.permute.xlu1 %3173  ;;  %v3236_v8 = vpop.permute.xlu0 %3235  ;;  %v6767_v35 = vld [vmem:[#allocation72_spill] sm:$0xff] }
 0x24f   : > { %v6024_v21 = vsel %vm3584_vm5, %v5884_v9, %v3236_v8  ;;  %v6766_v9 = vcombine.low %v6764_v4, %v6765_v5  ;;  %v6061_v10 = vrot.slane %v2972_v45, %v4253_v57  ;;  %v6768_v32 = vld [vmem:[#allocation32_spill] sm:$0xff]  ;;  %v6771_v45 = vld [vmem:[#allocation74_spill] sm:$0xff]  ;;  %v6083_v5 = vrot.slane %v2356_v41, %v4292_v29 }
 0x250   : > { %3401 = vrot.lane.b32.xlu1 %v3054_v30, %s4062_s4  ;;  %3463 = vrot.lane.b32.xlu0 %v2920_v24, %s4064_s12  ;;  %v6770_v30 = vcombine.low %v6768_v32, %v6769_v50 }
 0x251   : > { %v3547_v8 = vsel %vm3539_vm0, %v6766_v9, %v5615_v23  ;;  %v6058_v23 = vrot.slane %v2956_v43, %v4253_v57  ;;  %v1967_v57 = vcombine.low %v6027_v31, %v6030_v22 }
 0x252   : > { %v3556_v61 = vsel %vm3548_vm1, %v3547_v8, %v5769_v49  ;;  %v3178_v58 = vpop.permute.xlu1 %3177  ;;  %v3240_v56 = vpop.permute.xlu0 %3239  ;;  %v3541_v49 = vsel %vm3539_vm0, %v6770_v30, %v6767_v35  ;;  %v6090_v8 = vrot.slane %v2459_v16, %v4292_v29  ;;  %v6773_v16 = vld [vmem:[#allocation55_spill] sm:$0xff] }
 0x253   : > { %v3565_v24 = vsel %vm3557_vm2, %v3556_v61, %v5902_v54  ;;  %v3591_v43 = vsel %vm3584_vm5, %v5916_v36, %v3240_v56  ;;  %v3550_v4 = vsel %vm3548_vm1, %v3541_v49, %v6771_v45  ;;  %v6080_v54 = vrot.slane %v2324_v37, %v4292_v29  ;;  %v6772_v61 = vld [vmem:[#allocation69_spill] sm:$0xff] }
 0x254   : > { %v3574_v25 = vsel %vm3566_vm3, %v3565_v24, %v3178_v58  ;;  %3421 = vrot.lane.b32.xlu1 %v1423_v11, %s4063_s5  ;;  %3483 = vrot.lane.b32.xlu0 %v1289_v40, %s4065_s13  ;;  %v2868_v36 = vcombine.high %v5754_v62, %v5757_v13  ;;  %v3559_v9 = vsel %vm3557_vm2, %v3550_v4, %v5811_v7  ;;  %v6774_v24 = vld [vmem:[#allocation56_spill] sm:$0xff] }
 0x255   : > { %v6093_v11 = vrot.slane %v2491_v59, %v4292_v29  ;;  %v2900_v40 = vcombine.high %v5762_v28, %v5765_v1  ;;  %v3003_v37 = vcombine.low %v6050_v14, %v6055_v17  ;;  %v3035_v41 = vcombine.low %v6058_v23, %v6061_v10  ;;  %v6776_v1 = vld [vmem:[#allocation71_spill] sm:$0xff] }
 0x256   : > { %v3568_v62 = vsel %vm3566_vm3, %v3559_v9, %v5938_v12  ;;  %v3198_v13 = vpop.permute.xlu1 %3197  ;;  %v3260_v7 = vpop.permute.xlu0 %3259  ;;  %v6775_v58 = vcombine.low %v6773_v16, %v6774_v24  ;;  %v2377_v50 = vcombine.low %v6080_v54, %v6083_v5  ;;  %v2882_v30 = vrot.slane %v2868_v36, %v4292_v29  ;;  %v6778_v9 = vld [vmem:[#allocation78_spill] sm:$0xff] }
 0x257   : > { %v3577_v56 = vsel %vm3575_vm4, %v3568_v62, %v3198_v13  ;;  %v3594_v28 = vsel %vm3593_vm6, %v5955_v44, %v3260_v7  ;;  %v2511_v32 = vcombine.low %v6090_v8, %v6093_v11  ;;  %v2914_v4 = vrot.slane %v2900_v40, %v4292_v29  ;;  %v6779_v62 = vld [vmem:[#allocation79_spill] sm:$0xff] }
 0x258   : > { %v3543_v59 = vsel %vm3539_vm0, %v6775_v58, %v6772_v61  ;;  %3425 = vrot.lane.b32.xlu1 %v1967_v57, %s4063_s5  ;;  %3487 = vrot.lane.b32.xlu0 %v1833_v6, %s4065_s13  ;;  %v3011_v57 = vrot.slane %v3003_v37, %v4292_v29  ;;  %v3043_v6 = vrot.slane %v3035_v41, %v4292_v29 }
 0x259   : > { %v3552_v35 = vsel %vm3548_vm1, %v3543_v59, %v6776_v1  ;;  %v6780_v13 = vcombine.low %v6778_v9, %v6779_v62  ;;  %v2921_v58 = vcombine.low %v2882_v30, %v2914_v4  ;;  %v3004_v62 = vcombine.high %v6050_v14, %v6055_v17 }
 0x25a   : > { %v3561_v12 = vsel %vm3557_vm2, %v3552_v35, %v5840_v53  ;;  %v3202_v49 = vpop.permute.xlu1 %3201  ;;  %v3264_v45 = vpop.permute.xlu0 %3263  ;;  %v6777_v53 = vld [vmem:[#allocation66_spill] sm:$0xff]  ;;  %v3055_v24 = vcombine.low %v3011_v57, %v3043_v6 }
 0x25b   : > { %v3570_v44 = vsel %vm3566_vm3, %v3561_v12, %v5970_v42  ;;  %v3545_v7 = vsel %vm3539_vm0, %v6780_v13, %v6777_v53  ;;  %v3596_v36 = vsel %vm3593_vm6, %v5987_v46, %v3264_v45  ;;  %v3018_v14 = vrot.slane %v3004_v62, %v4292_v29 }
 0x25c   : > { %v3579_v61 = vsel %vm3575_vm4, %v3570_v44, %v3202_v49  ;;  %v3554_v42 = vsel %vm3548_vm1, %v3545_v7, %v5727_v26  ;;  %3429 = vrot.lane.b32.xlu1 %v2511_v32, %s4063_s5  ;;  %3491 = vrot.lane.b32.xlu0 %v2377_v50, %s4065_s13  ;;  %v1968_v50 = vcombine.high %v6027_v31, %v6030_v22  ;;  %vm3715_vm0 = vcmask 523264  }
 0x25d   : > { %v3563_v40 = vsel %vm3557_vm2, %v3554_v42, %v5877_v20  ;;  %v1424_v20 = vcombine.high %v5925_v19, %v5964_v47  ;;  %v1834_v19 = vcombine.high %v5979_v33, %v5990_v3  ;;  %v1372_v47 = vcombine.high %v5868_v48, %v5871_v38  ;;  %v6781_v38 = vld [vmem:[#allocation67_spill] sm:$0xff] }
 0x25e   : > { %v3572_v37 = vsel %vm3566_vm3, %v3563_v40, %v6018_v27  ;;  %v3206_v41 = vpop.permute.xlu1 %3205  ;;  %v3268_v16 = vpop.permute.xlu0 %3267  ;;  %v1290_v27 = vcombine.high %v5928_v39, %v5931_v51  ;;  %v2512_v31 = vcombine.high %v6090_v8, %v6093_v11  ;;  %v2378_v33 = vcombine.high %v6080_v54, %v6083_v5 }
 0x25f   : > { %v3581_v59 = vsel %vm3575_vm4, %v3572_v37, %v3206_v41  ;;  %v3598_v46 = vsel %vm3593_vm6, %v6024_v21, %v3268_v16  ;;  %v1916_v48 = vcombine.high %v5936_v52, %v5945_v18  ;;  %v3056_v8 = vcombine.high %v3011_v57, %v3043_v6 }
 0x260   : > { %3433 = vrot.lane.b32.xlu1 %v3055_v24, %s4063_s5  ;;  %3495 = vrot.lane.b32.xlu0 %v2921_v58, %s4065_s13  ;;  %v2922_v11 = vcombine.high %v2882_v30, %v2914_v4  ;;  %v1386_v54 = vrot.slane %v1372_v47, %v4292_v29  ;;  %v2492_v30 = vcombine.high %v6003_v0, %v6006_v34 }
 0x261   : > { %v1930_v52 = vrot.slane %v1916_v48, %v4292_v29 }
 0x262   : > { %v3210_v26 = vpop.permute.xlu1 %3209  ;;  %v3272_v1 = vpop.permute.xlu0 %3271  ;;  %v2506_v34 = vrot.slane %v2492_v30, %v4292_v29 }
 0x263   : > { %v3583_v35 = vsel %vm3575_vm4, %v3574_v25, %v3210_v26  ;;  %v3600_v12 = vsel %vm3593_vm6, %v3591_v43, %v3272_v1  ;;  %v1404_v25 = vcombine.high %v5887_v15, %v5890_v63  ;;  %v1948_v15 = vcombine.high %v6781_v38, %v5951_v55 }
 0x264   : > { %3453 = vrot.lane.b32.xlu1 %v1424_v20, %s4064_s12  ;;  %3515 = vrot.lane.b32.xlu0 %v1290_v27, %s4066_s15  ;;  %v2460_v55 = vcombine.high %v5993_v2, %v5996_v60  ;;  %v3036_v2 = vcombine.high %v6058_v23, %v6061_v10 }
 0x265   : > { %v1418_v5 = vrot.slane %v1404_v25, %v4292_v29  ;;  %v1962_v18 = vrot.slane %v1948_v15, %v4292_v29 }
 0x266   : > { %v3230_v21 = vpop.permute.xlu1 %3229  ;;  %v3292_v32 = vpop.permute.xlu0 %3291  ;;  %v2474_v0 = vrot.slane %v2460_v55, %v4292_v29  ;;  %v3050_v17 = vrot.slane %v3036_v2, %v4292_v29 }
 0x267   : > { %v3586_v39 = vsel %vm3584_vm5, %v3577_v56, %v3230_v21  ;;  %v3603_v51 = vsel %vm3602_vm7, %v3594_v28, %v3292_v32  ;;  %v1425_v6 = vcombine.low %v1386_v54, %v1418_v5  ;;  %v1969_v9 = vcombine.low %v1930_v52, %v1962_v18 }
 0x268   : > { %3457 = vrot.lane.b32.xlu1 %v1968_v50, %s4064_s12  ;;  %3519 = vrot.lane.b32.xlu0 %v1834_v19, %s4066_s15  ;;  %v2513_v40 = vcombine.low %v2474_v0, %v2506_v34  ;;  %v3057_v16 = vcombine.low %v3018_v14, %v3050_v17  ;;  %v1426_v26 = vcombine.high %v1386_v54, %v1418_v5 }
 0x269   : > { %v2514_v19 = vcombine.high %v2474_v0, %v2506_v34 }
 0x26a   : > { %v3234_v43 = vpop.permute.xlu1 %3233  ;;  %v3296_v44 = vpop.permute.xlu0 %3295 }
 0x26b   : > { %v3588_v3 = vsel %vm3584_vm5, %v3579_v61, %v3234_v43  ;;  %v3605_v22 = vsel %vm3602_vm7, %v3596_v36, %v3296_v44  ;;  %v3058_v43 = vcombine.high %v3018_v14, %v3050_v17 }
 0x26c   : > { %3461 = vrot.lane.b32.xlu1 %v2512_v31, %s4064_s12  ;;  %3523 = vrot.lane.b32.xlu0 %v2378_v33, %s4066_s15 }
 0x26e   : > { %v3238_v63 = vpop.permute.xlu1 %3237  ;;  %v3300_v56 = vpop.permute.xlu0 %3299 }
 0x26f   : > { %v3590_v28 = vsel %vm3584_vm5, %v3581_v59, %v3238_v63  ;;  %v3607_v49 = vsel %vm3602_vm7, %v3598_v46, %v3300_v56 }
 0x270   : > { %3465 = vrot.lane.b32.xlu1 %v3056_v8, %s4064_s12  ;;  %3527 = vrot.lane.b32.xlu0 %v2922_v11, %s4066_s15 }
 0x272   : > { %v3242_v45 = vpop.permute.xlu1 %3241  ;;  %v3304_v57 = vpop.permute.xlu0 %3303 }
 0x273   : > { %v3592_v4 = vsel %vm3584_vm5, %v3583_v35, %v3242_v45  ;;  %v3609_v53 = vsel %vm3602_vm7, %v3600_v12, %v3304_v57  ;;  %v1970_v35 = vcombine.high %v1930_v52, %v1962_v18 }
 0x274   : > { %3485 = vrot.lane.b32.xlu1 %v1425_v6, %s4065_s13 }
 0x276   : > { %v3262_v60 = vpop.permute.xlu1 %3261  ;;  %v3324_v13 = vpop.permute.xlu0 %3323 }
 0x277   : > { %v3595_v7 = vsel %vm3593_vm6, %v3586_v39, %v3262_v60  ;;  %v3612_v61 = vsel %vm3611_vm8, %v3603_v51, %v3324_v13 }
 0x278   : > { %3489 = vrot.lane.b32.xlu1 %v1969_v9, %s4065_s13 }
 0x27a   : > { %v3266_v36 = vpop.permute.xlu1 %3265  ;;  %v3328_v42 = vpop.permute.xlu0 %3327 }
 0x27b   : > { %v3597_v23 = vsel %vm3593_vm6, %v3588_v3, %v3266_v36  ;;  %v3614_v10 = vsel %vm3611_vm8, %v3605_v22, %v3328_v42 }
 0x27c   : > { %3493 = vrot.lane.b32.xlu1 %v2513_v40, %s4065_s13 }
 0x27e   : > { %v3270_v37 = vpop.permute.xlu1 %3269  ;;  %v3332_v41 = vpop.permute.xlu0 %3331 }
 0x27f   : > { %v3599_v24 = vsel %vm3593_vm6, %v3590_v28, %v3270_v37  ;;  %v3616_v58 = vsel %vm3611_vm8, %v3607_v49, %v3332_v41 }
 0x280   : > { %3497 = vrot.lane.b32.xlu1 %v3057_v16, %s4065_s13 }
 0x282   : > { %v3274_v59 = vpop.permute.xlu1 %3273  ;;  %v3336_v46 = vpop.permute.xlu0 %3335 }
 0x283   : > { %v3601_v29 = vsel %vm3593_vm6, %v3592_v4, %v3274_v59  ;;  %v3618_v1 = vsel %vm3611_vm8, %v3609_v53, %v3336_v46 }
 0x284   : > { %3517 = vrot.lane.b32.xlu1 %v1426_v26, %s4066_s15 }
 0x286   : > { %v3294_v20 = vpop.permute.xlu1 %3293  ;;  %v3356_v27 = vpop.permute.xlu0 %3355 }
 0x287   : > { %v3604_v12 = vsel %vm3602_vm7, %v3595_v7, %v3294_v20  ;;  %v3621_v21 = vsel %vm3620_vm9, %v3612_v61, %v3356_v27 }
 0x288   : > { %3521 = vrot.lane.b32.xlu1 %v1970_v35, %s4066_s15 }
 0x28a   : > { %v3298_v32 = vpop.permute.xlu1 %3297  ;;  %v3360_v50 = vpop.permute.xlu0 %3359 }
 0x28b   : > { %v3606_v39 = vsel %vm3602_vm7, %v3597_v23, %v3298_v32  ;;  %v6220_v51 = vsel %vm3620_vm9, %v3614_v10, %v3360_v50 }
 0x28c   : > { %3525 = vrot.lane.b32.xlu1 %v2514_v19, %s4066_s15 }
 0x28e   : > { %v3302_v47 = vpop.permute.xlu1 %3301  ;;  %v3364_v25 = vpop.permute.xlu0 %3363 }
 0x28f   : > { %v3608_v44 = vsel %vm3602_vm7, %v3599_v24, %v3302_v47  ;;  %v6225_v31 = vsel %vm3620_vm9, %v3616_v58, %v3364_v25 }
 0x290   : > { %3529 = vrot.lane.b32.xlu1 %v3058_v43, %s4066_s15 }
 0x292   : > { %v3306_v33 = vpop.permute.xlu1 %3305  ;;  %v3368_v3 = vpop.permute.xlu0 %3367 }
 0x293   : > { %v3610_v22 = vsel %vm3602_vm7, %v3601_v29, %v3306_v33  ;;  %v6230_v48 = vsel %vm3620_vm9, %v3618_v1, %v3368_v3 }
 0x296   : > { %v3326_v38 = vpop.permute.xlu1 %3325  ;;  %v3388_v15 = vpop.permute.xlu0 %3387 }
 0x297   : > { %v3613_v63 = vsel %vm3611_vm8, %v3604_v12, %v3326_v38  ;;  %v3630_v59 = vsel %vm3629_vm10, %v3621_v21, %v3388_v15 }
 0x29a   : > { %v3330_v56 = vpop.permute.xlu1 %3329  ;;  %v3392_v8 = vpop.permute.xlu0 %3391 }
 0x29b   : > { %v3615_v11 = vsel %vm3611_vm8, %v3606_v39, %v3330_v56  ;;  %v3632_v27 = vsel %vm3629_vm10, %v6220_v51, %v3392_v8 }
 0x29e   : > { %v3334_v54 = vpop.permute.xlu1 %3333  ;;  %v3396_v5 = vpop.permute.xlu0 %3395 }
 0x29f   : > { %v3617_v28 = vsel %vm3611_vm8, %v3608_v44, %v3334_v54  ;;  %v3634_v39 = vsel %vm3629_vm10, %v6225_v31, %v3396_v5 }
 0x2a2   : > { %v3338_v49 = vpop.permute.xlu1 %3337  ;;  %v3400_v52 = vpop.permute.xlu0 %3399 }
 0x2a3   : > { %v3619_v18 = vsel %vm3611_vm8, %v3610_v22, %v3338_v49  ;;  %v3636_v3 = vsel %vm3629_vm10, %v6230_v48, %v3400_v52 }
 0x2a6   : > { %v3358_v55 = vpop.permute.xlu1 %3357  ;;  %v3420_v30 = vpop.permute.xlu0 %3419 }
 0x2a7   : > { %v6237_v45 = vsel %vm3620_vm9, %v3613_v63, %v3358_v55  ;;  %v3639_v46 = vsel %vm3638_vm11, %v3630_v59, %v3420_v30 }
 0x2aa   : > { %v3362_v57 = vpop.permute.xlu1 %3361  ;;  %v3424_v6 = vpop.permute.xlu0 %3423 }
 0x2ab   : > { %v6240_v4 = vsel %vm3620_vm9, %v3615_v11, %v3362_v57  ;;  %v3641_v12 = vsel %vm3638_vm11, %v3632_v27, %v3424_v6 }
 0x2ae   : > { %v3366_v53 = vpop.permute.xlu1 %3365  ;;  %v3428_v9 = vpop.permute.xlu0 %3427 }
 0x2af   : > { %v6243_v62 = vsel %vm3620_vm9, %v3617_v28, %v3366_v53  ;;  %v3643_v51 = vsel %vm3638_vm11, %v3634_v39, %v3428_v9 }
 0x2b2   : > { %v3370_v2 = vpop.permute.xlu1 %3369  ;;  %v3432_v60 = vpop.permute.xlu0 %3431 }
 0x2b3   : > { %v6246_v13 = vsel %vm3620_vm9, %v3619_v18, %v3370_v2  ;;  %v3645_v38 = vsel %vm3638_vm11, %v3636_v3, %v3432_v60 }
 0x2b6   : > { %v3390_v0 = vpop.permute.xlu1 %3389  ;;  %v3452_v34 = vpop.permute.xlu0 %3451 }
 0x2b7   : > { %v3648_v26 = vsel %vm3647_vm12, %v3639_v46, %v3452_v34  ;;  %v3631_v28 = vsel %vm3629_vm10, %v6237_v45, %v3390_v0 }
 0x2ba   : > { %v3394_v7 = vpop.permute.xlu1 %3393  ;;  %v3456_v61 = vpop.permute.xlu0 %3455 }
 0x2bb   : > { %v3650_v21 = vsel %vm3647_vm12, %v3641_v12, %v3456_v61  ;;  %v3633_v30 = vsel %vm3629_vm10, %v6240_v4, %v3394_v7 }
 0x2be   : > { %v6248_v36 = vpop.permute.xlu1 %3397  ;;  %v3460_v42 = vpop.permute.xlu0 %3459 }
 0x2bf   : > { %v3652_v25 = vsel %vm3647_vm12, %v3643_v51, %v3460_v42  ;;  %v3635_v2 = vsel %vm3629_vm10, %v6243_v62, %v6248_v36 }
 0x2c2   : > { %v6250_v40 = vpop.permute.xlu1 %3401  ;;  %v3464_v14 = vpop.permute.xlu0 %3463 }
 0x2c3   : > { %v3654_v31 = vsel %vm3647_vm12, %v3645_v38, %v3464_v14  ;;  %v3637_v61 = vsel %vm3629_vm10, %v6246_v13, %v6250_v40 }
 0x2c6   : > { %v3422_v17 = vpop.permute.xlu1 %3421  ;;  %v3484_v23 = vpop.permute.xlu0 %3483 }
 0x2c7   : > { %v3657_v29 = vsel %vm3656_vm13, %v3648_v26, %v3484_v23  ;;  %v3640_v49 = vsel %vm3638_vm11, %v3631_v28, %v3422_v17 }
 0x2ca   : > { %v3426_v10 = vpop.permute.xlu1 %3425  ;;  %v3488_v37 = vpop.permute.xlu0 %3487 }
 0x2cb   : > { %v3659_v32 = vsel %vm3656_vm13, %v3650_v21, %v3488_v37  ;;  %v3642_v6 = vsel %vm3638_vm11, %v3633_v30, %v3426_v10 }
 0x2ce   : > { %v3430_v41 = vpop.permute.xlu1 %3429  ;;  %v3492_v16 = vpop.permute.xlu0 %3491 }
 0x2cf   : > { %v3661_v43 = vsel %vm3656_vm13, %v3652_v25, %v3492_v16  ;;  %v3644_v0 = vsel %vm3638_vm11, %v3635_v2, %v3430_v41 }
 0x2d2   : > { %v6252_v24 = vpop.permute.xlu1 %3433  ;;  %v3496_v58 = vpop.permute.xlu0 %3495 }
 0x2d3   : > { %v3663_v15 = vsel %vm3656_vm13, %v3654_v31, %v3496_v58  ;;  %v3646_v62 = vsel %vm3638_vm11, %v3637_v61, %v6252_v24 }
 0x2d6   : > { %v3454_v1 = vpop.permute.xlu1 %3453  ;;  %v3516_v20 = vpop.permute.xlu0 %3515 }
 0x2d7   : > { %v3666_v35 = vsel %vm3665_vm14, %v3657_v29, %v3516_v20  ;;  %v3649_v52 = vsel %vm3647_vm12, %v3640_v49, %v3454_v1 }
 0x2d8   : > { %3682 = vrot.lane.b32.xlu0 %v3666_v35, %s4067_s22 }
 0x2da   : > { %v3458_v50 = vpop.permute.xlu1 %3457  ;;  %v3520_v19 = vpop.permute.xlu0 %3519 }
 0x2db   : > { %v3668_v47 = vsel %vm3665_vm14, %v3659_v32, %v3520_v19  ;;  %v3651_v53 = vsel %vm3647_vm12, %v3642_v6, %v3458_v50 }
 0x2dc   : > { %3686 = vrot.lane.b32.xlu0 %v3668_v47, %s4067_s22 }
 0x2de   : > { %v3462_v44 = vpop.permute.xlu1 %3461  ;;  %v3524_v33 = vpop.permute.xlu0 %3523 }
 0x2df   : > { %v3670_v22 = vsel %vm3665_vm14, %v3661_v43, %v3524_v33  ;;  %v3653_v4 = vsel %vm3647_vm12, %v3644_v0, %v3462_v44 }
 0x2e0   : > { %3690 = vrot.lane.b32.xlu0 %v3670_v22, %s4067_s22 }
 0x2e2   : > { %v3466_v63 = vpop.permute.xlu1 %3465  ;;  %v3528_v56 = vpop.permute.xlu0 %3527 }
 0x2e3   : > { %v3672_v8 = vsel %vm3665_vm14, %v3663_v15, %v3528_v56  ;;  %v3655_v36 = vsel %vm3647_vm12, %v3646_v62, %v3466_v63 }
 0x2e4   : > { %3694 = vrot.lane.b32.xlu0 %v3672_v8, %s4067_s22 }
 0x2e6   : > { %v3486_v11 = vpop.permute.xlu1 %3485 }
 0x2e7   : > { %v3658_v18 = vsel %vm3656_vm13, %v3649_v52, %v3486_v11 }
 0x2ea   : > { %v3490_v54 = vpop.permute.xlu1 %3489 }
 0x2eb   : > { %v3660_v45 = vsel %vm3656_vm13, %v3651_v53, %v3490_v54 }
 0x2ee   : > { %v3494_v5 = vpop.permute.xlu1 %3493 }
 0x2ef   : > { %v3662_v34 = vsel %vm3656_vm13, %v3653_v4, %v3494_v5 }
 0x2f2   : > { %v3498_v48 = vpop.permute.xlu1 %3497 }
 0x2f3   : > { %v3664_v14 = vsel %vm3656_vm13, %v3655_v36, %v3498_v48 }
 0x2f6   : > { %v3518_v55 = vpop.permute.xlu1 %3517 }
 0x2f7   : > { %v3667_v57 = vsel %vm3665_vm14, %v3658_v18, %v3518_v55 }
 0x2f8   : > { %3684 = vrot.lane.b32.xlu1 %v3667_v57, %s4067_s22 }
 0x2fa   : > { %v3522_v9 = vpop.permute.xlu1 %3521 }
 0x2fb   : > { %v3669_v60 = vsel %vm3665_vm14, %v3660_v45, %v3522_v9 }
 0x2fc   : > { %3688 = vrot.lane.b32.xlu1 %v3669_v60, %s4067_s22 }
 0x2fe   : > { %v3526_v7 = vpop.permute.xlu1 %3525 }
 0x2ff   : > { %v3671_v42 = vsel %vm3665_vm14, %v3662_v34, %v3526_v7 }
 0x300   : > { %3692 = vrot.lane.b32.xlu1 %v3671_v42, %s4067_s22 }
 0x302   : > { %v3530_v17 = vpop.permute.xlu1 %3529 }
 0x303   : > { %v3673_v23 = vsel %vm3665_vm14, %v3664_v14, %v3530_v17 }
 0x304   : > { %3696 = vrot.lane.b32.xlu1 %v3673_v23, %s4067_s22 }
 0x34a   : > { %v3683_v10 = vpop.permute.xlu0 %3682 }
 0x34b   : > { %v3707_v13 = vsel %vm3706_vm15, %v3666_v35, %v3683_v10 }
 0x34c   : > { %3716 = vst.msk [vmem:[%s166_s23] sm:$0xff] %vm3715_vm0, %v3707_v13 }
 0x34e   : > { %v3687_v40 = vpop.permute.xlu0 %3686 }
 0x34f   : > { %v3709_v37 = vsel %vm3706_vm15, %v3668_v47, %v3687_v40 }
 0x350   : > { %3718 = vst.msk [vmem:[%s166_s23 + $0x10] sm:$0xff] %vm3715_vm0, %v3709_v37 }
 0x352   : > { %v3691_v41 = vpop.permute.xlu0 %3690 }
 0x353   : > { %v3711_v16 = vsel %vm3706_vm15, %v3670_v22, %v3691_v41 }
 0x354   : > { %3720 = vst.msk [vmem:[%s166_s23 + $0x20] sm:$0xff] %vm3715_vm0, %v3711_v16 }
 0x356   : > { %v3695_v24 = vpop.permute.xlu0 %3694 }
 0x357   : > { %v3713_v58 = vsel %vm3706_vm15, %v3672_v8, %v3695_v24 }
 0x358   : > { %3722 = vst.msk [vmem:[%s166_s23 + $0x30] sm:$0xff] %vm3715_vm0, %v3713_v58 }
 0x36a   : > { %v3685_v59 = vpop.permute.xlu1 %3684 }
 0x36b   : > { %v3708_v46 = vsel %vm3706_vm15, %v3667_v57, %v3685_v59 }
 0x36c   : > { %3717 = vst.msk [vmem:[%s166_s23 + $0x8] sm:$0xff] %vm3715_vm0, %v3708_v46 }
 0x36e   : > { %v3689_v26 = vpop.permute.xlu1 %3688 }
 0x36f   : > { %v3710_v29 = vsel %vm3706_vm15, %v3669_v60, %v3689_v26 }
 0x370   : > { %3719 = vst.msk [vmem:[%s166_s23 + $0x18] sm:$0xff] %vm3715_vm0, %v3710_v29 }
 0x372   : > { %v3693_v1 = vpop.permute.xlu1 %3692 }
 0x373   : > { %v3712_v20 = vsel %vm3706_vm15, %v3671_v42, %v3693_v1 }
 0x374   : > { %3721 = vst.msk [vmem:[%s166_s23 + $0x28] sm:$0xff] %vm3715_vm0, %v3712_v20 }
 0x376   : > { %v3697_v27 = vpop.permute.xlu1 %3696 }
 0x377   : > { %v3714_v35 = vsel %vm3706_vm15, %v3673_v23, %v3697_v27 }
 0x378   : > { %3723 = vst.msk [vmem:[%s166_s23 + $0x38] sm:$0xff] %vm3715_vm0, %v3714_v35 }
 0x379   : > { %3978 = shalt.err (!%p3975_p6)
}
 0x37a   : > { %s3979_s3 = scalar_lea.hbm %s6334_s27, 1024  ;;  %s3983_s12 = scalar_lea.hbm %s6386_s1, 2048 }
 0x37b   : > { %p3980_p7 = scmp.ne.s32.totalorder %s6334_s27, %s3979_s3  ;;  %p3984_p13 = scmp.lt.s32.totalorder %s6334_s27, %s6386_s1 }
 0x37c   : > { %p3985_p2 = scmp.lt.s32.totalorder %s3983_s12, %s3979_s3 }
 0x37d   : > { %p3981_p10 = pnand %p3980_p7, %p4131_p9 }
 0x37e   : > { %p3986_p8 = por %p3985_p2, %p3984_p13 }
 0x37f   : > { %p3982_p4 = pneg %p3981_p10 }
 0x381   : > { %p3987_p12 = pnand %p3986_p8, %p3982_p4 }
 0x383   : > { %3990 = shalt.err (!%p3987_p12)
}
 0x384   : > { %s4069_s22 = smov 128  }
 0x385   : > { %3856 = dma.vmem_to_hbm [thread:$0]  (%p4131_p9), %s6329_s17, 1024, %s6334_s27, %s3725_s28, %s4069_s22, %s4069_s22, %s4055_s26  }
 0x386 PF: > { %s3758_s23 = sand.u32 1, %s4025_s6   ;;  %p6782_p0 = scmp.ge.s32.totalorder %s4045_s11, 2 }
 0x387   : > { %s3759_s18 = scalar_lea.sflag [#allocation4], %s3758_s23 }
 0x388   : > { %p3863_p1 = pnand %p6782_p0, %p4138_p11 }
 0x38a   : > { %p3864_p3 = pneg %p3863_p1 }
 0x38c   : > { %4020 = dma.done.wait (%p3864_p3), %s3759_s18, 1024  }
 0x38d   : > { %4022 = vsyncadd (%p3864_p3), %s3759_s18, 4294966272  ;;  %s17_s11 = sadd.s32 1, %s4045_s11   ;;  %s6783_s6 = smov %s4029_s7 }
 0x38e   : > { %p14_p5 = scmp.ge.s32.totalorder %s17_s11, 4   ;;  %s6784_s7 = smov %s4033_s8 }
 0x38f   : > { %s6785_s8 = smov %s4136_s20  ;;  %s6786_s9 = smov %s4041_s10 }
 0x390   : > { %s6787_s10 = smov %s6789_s14  ;;  %16 = sbr.rel (!%p14_p5) target bundleno = 6 (0x6), region = 69 }
 0x395   :  { %3764 = vsyncpa [#allocation3], 1 }
 0x396   :  { %3766 = vsyncpa [#allocation3 + $0x1], 1 }
 0x397   :  { %3767 = vsyncpa [#allocation4], 1 }
 0x398   :  { %3769 = vsyncpa [#allocation4 + $0x1], 1 }

</bundles_post_ra>
